<compile_context>
chip_gen: v5e
topology: v5e:2x2
jax: 0.10.0
libtpu: 0.0.40
codegen_flags: <defaults>
</compile_context>

<pallas_src>
import jax
import jax.numpy as jnp
from jax.experimental import pallas as pl
from jax.experimental.pallas import tpu as pltpu

LANE = 128  # TPU lane width; every kernel N dim / weight N dim padded to this


# ---------------------------------------------------------------------------
# Pallas kernels
# ---------------------------------------------------------------------------
def _conv_relu_pool_kernel(p_ref, w_ref, b_ref, o_ref):
    """Fused im2col-matmul + 2x2 max-pool + bias + ReLU.

    p_ref: (tile_m, 4*kpad) bf16 — the four pool-corner patch matrices
           concatenated along lanes (each padded to kpad, a 128 multiple).
    w_ref: (kpad, 128) bf16 (Cout zero-padded).  b_ref: (1, 128) f32.
    o_ref: (tile_m, 128) bf16, lane-dense.
    """
    kpad = w_ref.shape[0]
    w = w_ref[...]
    # Running max over the four pool corners; bias added once afterwards.
    y = jnp.dot(p_ref[:, 0:kpad], w, preferred_element_type=jnp.float32)
    for c in range(1, 4):
        y = jnp.maximum(
            y, jnp.dot(p_ref[:, c * kpad:(c + 1) * kpad], w,
                       preferred_element_type=jnp.float32))
    # relu(max(x_i) + b) == pool(relu(conv + b)) since bias is corner-shared.
    o_ref[...] = jnp.maximum(y + b_ref[...], 0.0).astype(o_ref.dtype)


def _conv2_fc_kernel(p_ref, cw_ref, cb_ref, w1_ref, b1_ref,
                     w2_ref, b2_ref, w3_ref, b3_ref, o_ref):
    """conv2(+pool+ReLU) -> fc1+ReLU -> fc2+ReLU -> fc3, all in VMEM.

    p_ref : (16*Bp, 4*kpad) bf16 conv2 corner patches, rows ordered pos-major
            (row = pos*Bp + b, pos = pooled 4x4 position, Bp = batch padded to 8).
    cw_ref: (kpad, 128) bf16 conv2 weights;  cb_ref: (1, 128) f32 bias.
    w1_ref: (16, 128, 128) bf16 — fc1 weights regrouped per pooled position so
            fc1 = sum_pos  y2[pos] @ w1[pos]  (no in-kernel flatten/reshape).
    """
    kpad = cw_ref.shape[0]
    bp = o_ref.shape[0]
    n_pos = w1_ref.shape[0]          # 16 pooled spatial positions (4x4)

    # ---- conv2 + pool + ReLU (running max, hoisted bias) ----
    cw = cw_ref[...]
    y = jnp.dot(p_ref[:, 0:kpad], cw, preferred_element_type=jnp.float32)
    for c in range(1, 4):
        y = jnp.maximum(
            y, jnp.dot(p_ref[:, c * kpad:(c + 1) * kpad], cw,
                       preferred_element_type=jnp.float32))
    y = jnp.maximum(y + cb_ref[...], 0.0)              # (16*Bp, 128) f32

    # ---- fc1 as 16 accumulated per-position matmuls ----
    h = jnp.dot(y[0:bp, :].astype(jnp.bfloat16), w1_ref[0],
                preferred_element_type=jnp.float32)
    for pos in range(1, n_pos):
        blk = y[pos * bp:(pos + 1) * bp, :].astype(jnp.bfloat16)
        h = h + jnp.dot(blk, w1_ref[pos], preferred_element_type=jnp.float32)
    h = jnp.maximum(h + b1_ref[...], 0.0).astype(jnp.bfloat16)

    # ---- fc2 + ReLU, fc3 ----
    h = jnp.maximum(jnp.dot(h, w2_ref[...], preferred_element_type=jnp.float32)
                    + b2_ref[...], 0.0).astype(jnp.bfloat16)
    h = jnp.dot(h, w3_ref[...], preferred_element_type=jnp.float32) + b3_ref[...]
    o_ref[...] = h.astype(o_ref.dtype)


# ---------------------------------------------------------------------------
# JAX layout glue (no compute): corner-grouped, lane-padded im2col patches
# ---------------------------------------------------------------------------
def _corner_patches(x_nhwc, kh, kw, di, dj, pos_major=False):
    """Rows = receptive fields of conv-output positions (2p+di, 2q+dj); features
    ordered (ki, kj, c) to match the flattened weights.  pos_major orders rows
    (p, q, b) so batch is fastest — needed by the fused conv2+fc kernel."""
    B, H, W, C = x_nhwc.shape
    Ho, Wo = H - kh + 1, W - kw + 1
    Po, Pw = Ho // 2, Wo // 2
    taps = []
    for ki in range(kh):
        for kj in range(kw):
            r0, c0 = di + ki, dj + kj
            taps.append(jax.lax.slice(
                x_nhwc, (0, r0, c0, 0),
                (B, r0 + 2 * (Po - 1) + 1, c0 + 2 * (Pw - 1) + 1, C),
                (1, 2, 2, 1)))                          # (B, Po, Pw, C)
    p = jnp.concatenate(taps, axis=-1)                   # (B, Po, Pw, kh*kw*C)
    if pos_major:
        p = p.transpose(1, 2, 0, 3)                      # (Po, Pw, B, K)
    return p.reshape(-1, kh * kw * C)


def _consolidated_patches(x_nhwc, kh, kw, kpad, pos_major=False):
    """Four corners concatenated along lanes, each zero-padded to kpad columns
    -> one lane-dense (M, 4*kpad) operand (single DMA per grid step)."""
    pieces = []
    for di in (0, 1):
        for dj in (0, 1):
            p = _corner_patches(x_nhwc, kh, kw, di, dj, pos_major)
            pieces.append(p)
            if p.shape[1] < kpad:
                pieces.append(jnp.zeros((p.shape[0], kpad - p.shape[1]), p.dtype))
    return jnp.concatenate(pieces, axis=-1)


def _pick_conv_tile(batch, unit, max_rows=576):
    """Largest row tile = unit*g (g | batch, so the grid covers M exactly, no
    jnp.pad / dead rows), capped at max_rows; prefer >= 2 grid steps so both
    v7x TensorCores get work.  unit=144 is already a multiple of 8."""
    divisors = [g for g in range(1, batch + 1)
                if batch % g == 0 and unit * g <= max_rows]
    if not divisors:
        return unit
    pref = [g for g in divisors if batch // g >= 2]
    return unit * max(pref if pref else divisors)


# ---------------------------------------------------------------------------
# Wrappers around the two pallas_calls
# ---------------------------------------------------------------------------
def conv_relu_pool(x_nhwc, w_pad, b_pad):
    """conv1: 'valid' 5x5 conv + ReLU + 2x2/2 max-pool, bf16 lane-dense output."""
    B, H, W, C = x_nhwc.shape
    kh = kw = 5
    Po, Pw = (H - kh + 1) // 2, (W - kw + 1) // 2
    unit = Po * Pw                       # 144 rows per batch element
    M = B * unit
    kpad = w_pad.shape[0]                # 128
    patches = _consolidated_patches(x_nhwc, kh, kw, kpad)      # (M, 4*kpad) bf16
    tile_m = _pick_conv_tile(B, unit)

    out = pl.pallas_call(
        _conv_relu_pool_kernel,
        out_shape=jax.ShapeDtypeStruct((M, LANE), jnp.bfloat16),
        grid=(M // tile_m,),
        in_specs=[pl.BlockSpec((tile_m, 4 * kpad), lambda i: (i, 0)),
                  pl.BlockSpec((kpad, LANE), lambda i: (0, 0)),
                  pl.BlockSpec((1, LANE), lambda i: (0, 0))],
        out_specs=pl.BlockSpec((tile_m, LANE), lambda i: (i, 0)),
        compiler_params=pltpu.CompilerParams(dimension_semantics=("parallel",)),
    )(patches, w_pad, b_pad)
    return out.reshape(B, Po, Pw, LANE)


def conv2_fc(pool1, p):
    """Fused conv2(+pool+ReLU) + fc1/fc2/fc3 in a single launch.

    pool1: (B, 12, 12, 6) bf16 — conv1's pooled activation (real channels only).
    Returns (B, 3) f32 logits.
    """
    B = pool1.shape[0]
    Bp = ((B + 7) // 8) * 8              # sublane-align the per-position batch slice
    if Bp != B:
        pool1 = jnp.pad(pool1, ((0, Bp - B), (0, 0), (0, 0), (0, 0)))
    kpad = p["c2_w"].shape[0]            # 256
    patches = _consolidated_patches(pool1, 5, 5, kpad, pos_major=True)  # (16*Bp, 4*kpad)
    assert patches.shape[0] == 16 * Bp

    out = pl.pallas_call(
        _conv2_fc_kernel,
        out_shape=jax.ShapeDtypeStruct((Bp, LANE), jnp.float32),
        in_specs=[pl.BlockSpec((16 * Bp, 4 * kpad), lambda: (0, 0)),
                  pl.BlockSpec((kpad, LANE), lambda: (0, 0)),
                  pl.BlockSpec((1, LANE), lambda: (0, 0)),
                  pl.BlockSpec((16, LANE, LANE), lambda: (0, 0, 0)),
                  pl.BlockSpec((1, LANE), lambda: (0, 0)),
                  pl.BlockSpec((LANE, LANE), lambda: (0, 0)),
                  pl.BlockSpec((1, LANE), lambda: (0, 0)),
                  pl.BlockSpec((LANE, LANE), lambda: (0, 0)),
                  pl.BlockSpec((1, LANE), lambda: (0, 0))],
        out_specs=pl.BlockSpec((Bp, LANE), lambda: (0, 0)),
    )(patches, p["c2_w"], p["c2_b"], p["w1r"], p["b1"],
      p["w2"], p["b2"], p["w3"], p["b3"])
    return out[:B, :3]


# ---------------------------------------------------------------------------
# Parameters (PyTorch layouts) + one-time repack for the kernels
# ---------------------------------------------------------------------------
def init_params(key):
    def uniform(k, shape, fan_in):
        bound = 1.0 / jnp.sqrt(jnp.float32(fan_in))
        return jax.random.uniform(k, shape, jnp.float32, -bound, bound)

    ks = jax.random.split(key, 10)
    return {
        "conv1_w": uniform(ks[0], (6, 2, 5, 5), 2 * 5 * 5),
        "conv1_b": uniform(ks[1], (6,), 2 * 5 * 5),
        "conv2_w": uniform(ks[2], (16, 6, 5, 5), 6 * 5 * 5),
        "conv2_b": uniform(ks[3], (16,), 6 * 5 * 5),
        "fc1_w": uniform(ks[4], (120, 16 * 4 * 4), 16 * 4 * 4),
        "fc1_b": uniform(ks[5], (120,), 16 * 4 * 4),
        "fc2_w": uniform(ks[6], (84, 120), 120),
        "fc2_b": uniform(ks[7], (84,), 120),
        "fc3_w": uniform(ks[8], (3, 84), 84),
        "fc3_b": uniform(ks[9], (3,), 84),
    }


def prepare_params(params):
    """One-time repack: flatten (ki,kj,cin)-major, zero-pad to lane-dense sizes,
    cast MXU operands to bf16 (biases stay f32), and regroup fc1's weights by
    pooled spatial position so the fused kernel needs no in-kernel flatten."""
    def pad2(m, rows, cols=LANE):
        out = jnp.zeros((rows, cols), jnp.float32)
        return out.at[:m.shape[0], :m.shape[1]].set(m)

    def conv_pack(w, b, kpad):
        cout, cin, kh, kw = w.shape
        w_mat = w.transpose(2, 3, 1, 0).reshape(kh * kw * cin, cout)  # (ki,kj,cin) rows
        return pad2(w_mat, kpad).astype(jnp.bfloat16), pad2(b.reshape(1, -1), 1)

    c1_w, c1_b = conv_pack(params["conv1_w"], params["conv1_b"], 128)   # K=50  -> 128
    c2_w, c2_b = conv_pack(params["conv2_w"], params["conv2_b"], 256)   # K=150 -> 256

    # fc1: PyTorch NCHW flatten index = c*16 + qi*4 + qj; pos = qi*4 + qj.
    # W1r[pos, c, n] = fc1_w[n, c*16 + pos], zero-padded to (16, 128, 128).
    fc1_w_t = params["fc1_w"].T                                  # (256, 120), row = feature
    idx = jnp.arange(16)[None, :] * 16 + jnp.arange(16)[:, None]  # [pos, c] -> c*16 + pos
    w1_pc = fc1_w_t[idx]                                          # (16, 16, 120)
    w1r = jnp.zeros((16, LANE, LANE), jnp.float32).at[:, :16, :120].set(w1_pc)
    w1r = w1r.astype(jnp.bfloat16)

    return {
        "c1_w": c1_w, "c1_b": c1_b, "c2_w": c2_w, "c2_b": c2_b,
        "w1r": w1r, "b1": pad2(params["fc1_b"].reshape(1, -1), 1),
        "w2": pad2(params["fc2_w"].T, LANE).astype(jnp.bfloat16),
        "b2": pad2(params["fc2_b"].reshape(1, -1), 1),
        "w3": pad2(params["fc3_w"].T, LANE).astype(jnp.bfloat16),
        "b3": pad2(params["fc3_b"].reshape(1, -1), 1),
    }


# ---------------------------------------------------------------------------
# Forward (matches CustomLeNet5.forward semantics)
# ---------------------------------------------------------------------------
def lenet5_forward(p, x):
    # x: (B, 2, 28, 28) NCHW f32 (PyTorch layout)
    x = x.transpose(0, 2, 3, 1).astype(jnp.bfloat16)        # NHWC, bf16 MXU operand
    y1 = conv_relu_pool(x, p["c1_w"], p["c1_b"])            # (B, 12, 12, 128) bf16
    return conv2_fc(y1[..., :6], p)                          # (B, 3) f32 logits


if __name__ == "__main__":
    key = jax.random.PRNGKey(0)
    pkey, xkey = jax.random.split(key)
    params = init_params(pkey)
    prepped = prepare_params(params)
    # Input must be 28x28 with 2 channels so the flattened feature is 16*4*4.
    x = jax.random.normal(xkey, (2, 2, 28, 28), jnp.float32)
    out = jax.jit(lenet5_forward)(prepped, x)
    out = jax.block_until_ready(out)
    assert out.shape == (2, 3)
    assert bool(jnp.all(jnp.isfinite(out)))
    print("KERNEL_OK")
</pallas_src>

<mosaic_0001>
module attributes {stable_mosaic.version = 11 : i64} {
  func.func @_conv_relu_pool_kernel(%arg0: i32, %arg1: memref<144x512xbf16, #tpu.memory_space<vmem>>, %arg2: memref<128x128xbf16, #tpu.memory_space<vmem>>, %arg3: memref<1x128xf32, #tpu.memory_space<vmem>>, %arg4: memref<144x128xbf16, #tpu.memory_space<vmem>>) attributes {dimension_semantics = [#tpu.dimension_semantics<parallel>], iteration_bounds = array<i64: 2>, scalar_prefetch = 0 : i64, scratch_operands = 0 : i64, tpu.core_type = #tpu.core_type<tc>, window_params = [{transform_indices = @transform_0, window_bounds = array<i64: 144, 512>}, {pipeline_mode = #tpu.pipeline_mode<synchronous>, transform_indices = @transform_1, window_bounds = array<i64: 128, 128>}, {pipeline_mode = #tpu.pipeline_mode<synchronous>, transform_indices = @transform_2, window_bounds = array<i64: 1, 128>}, {transform_indices = @transform_3, window_bounds = array<i64: 144, 128>}]} {
    %c0 = arith.constant 0 : index
    %c0_0 = arith.constant 0 : index
    %0 = vector.load %arg2[%c0, %c0_0] : memref<128x128xbf16, #tpu.memory_space<vmem>>, vector<128x128xbf16>
    %c0_1 = arith.constant 0 : index
    %c0_2 = arith.constant 0 : index
    %1 = vector.load %arg1[%c0_1, %c0_2] : memref<144x512xbf16, #tpu.memory_space<vmem>>, vector<144x128xbf16>
    %cst = arith.constant dense<0.000000e+00> : vector<144x128xf32>
    %2 = tpu.matmul %1, %0, %cst {dimension_numbers = #tpu.dot_dimension_numbers<[1], [0], [0], [1], [0, 0, 1, 1], [], []>} : vector<144x128xbf16>, vector<128x128xbf16>, vector<144x128xf32> -> vector<144x128xf32>
    %c0_3 = arith.constant 0 : index
    %c128 = arith.constant 128 : index
    %3 = vector.load %arg1[%c0_3, %c128] : memref<144x512xbf16, #tpu.memory_space<vmem>>, vector<144x128xbf16>
    %cst_4 = arith.constant dense<0.000000e+00> : vector<144x128xf32>
    %4 = tpu.matmul %3, %0, %cst_4 {dimension_numbers = #tpu.dot_dimension_numbers<[1], [0], [0], [1], [0, 0, 1, 1], [], []>} : vector<144x128xbf16>, vector<128x128xbf16>, vector<144x128xf32> -> vector<144x128xf32>
    %5 = arith.maximumf %2, %4 : vector<144x128xf32>
    %c0_5 = arith.constant 0 : index
    %c256 = arith.constant 256 : index
    %6 = vector.load %arg1[%c0_5, %c256] : memref<144x512xbf16, #tpu.memory_space<vmem>>, vector<144x128xbf16>
    %cst_6 = arith.constant dense<0.000000e+00> : vector<144x128xf32>
    %7 = tpu.matmul %6, %0, %cst_6 {dimension_numbers = #tpu.dot_dimension_numbers<[1], [0], [0], [1], [0, 0, 1, 1], [], []>} : vector<144x128xbf16>, vector<128x128xbf16>, vector<144x128xf32> -> vector<144x128xf32>
    %8 = arith.maximumf %5, %7 : vector<144x128xf32>
    %c0_7 = arith.constant 0 : index
    %c384 = arith.constant 384 : index
    %9 = vector.load %arg1[%c0_7, %c384] : memref<144x512xbf16, #tpu.memory_space<vmem>>, vector<144x128xbf16>
    %cst_8 = arith.constant dense<0.000000e+00> : vector<144x128xf32>
    %10 = tpu.matmul %9, %0, %cst_8 {dimension_numbers = #tpu.dot_dimension_numbers<[1], [0], [0], [1], [0, 0, 1, 1], [], []>} : vector<144x128xbf16>, vector<128x128xbf16>, vector<144x128xf32> -> vector<144x128xf32>
    %11 = arith.maximumf %8, %10 : vector<144x128xf32>
    %c0_9 = arith.constant 0 : index
    %c0_10 = arith.constant 0 : index
    %12 = vector.load %arg3[%c0_9, %c0_10] : memref<1x128xf32, #tpu.memory_space<vmem>>, vector<1x128xf32>
    %13 = vector.broadcast %12 : vector<1x128xf32> to vector<144x128xf32>
    %14 = arith.addf %11, %13 : vector<144x128xf32>
    %cst_11 = arith.constant 0.000000e+00 : f32
    %15 = vector.broadcast %cst_11 : f32 to vector<144x128xf32>
    %16 = arith.maximumf %14, %15 : vector<144x128xf32>
    %17 = arith.truncf %16 : vector<144x128xf32> to vector<144x128xbf16>
    %c0_12 = arith.constant 0 : index
    %c0_13 = arith.constant 0 : index
    %18 = vector.load %arg4[%c0_12, %c0_13] : memref<144x128xbf16, #tpu.memory_space<vmem>>, vector<144x128xbf16>
    tpu.vector_store %arg4[%c0_12, %c0_13], %17 {strides = array<i32>} : memref<144x128xbf16, #tpu.memory_space<vmem>>, vector<144x128xbf16>,
    return
  }
  func.func @transform_0(%arg0: i32) -> (i32, i32) {
    %c0_i32 = arith.constant 0 : i32
    %c0_i32_0 = arith.constant 0 : i32
    return %arg0, %c0_i32 : i32, i32
  }
  func.func @transform_1(%arg0: i32) -> (i32, i32) {
    %c0_i32 = arith.constant 0 : i32
    %c0_i32_0 = arith.constant 0 : i32
    %c0_i32_1 = arith.constant 0 : i32
    return %c0_i32, %c0_i32_0 : i32, i32
  }
  func.func @transform_2(%arg0: i32) -> (i32, i32) {
    %c0_i32 = arith.constant 0 : i32
    %c0_i32_0 = arith.constant 0 : i32
    %c0_i32_1 = arith.constant 0 : i32
    return %c0_i32, %c0_i32_0 : i32, i32
  }
  func.func @transform_3(%arg0: i32) -> (i32, i32) {
    %c0_i32 = arith.constant 0 : i32
    %c0_i32_0 = arith.constant 0 : i32
    return %arg0, %c0_i32 : i32, i32
  }
}

module attributes {stable_mosaic.version = 11 : i64} {
  func.func @_conv2_fc_kernel(%arg0: memref<128x1024xbf16, #tpu.memory_space<vmem>>, %arg1: memref<256x128xbf16, #tpu.memory_space<vmem>>, %arg2: memref<1x128xf32, #tpu.memory_space<vmem>>, %arg3: memref<16x128x128xbf16, #tpu.memory_space<vmem>>, %arg4: memref<1x128xf32, #tpu.memory_space<vmem>>, %arg5: memref<128x128xbf16, #tpu.memory_space<vmem>>, %arg6: memref<1x128xf32, #tpu.memory_space<vmem>>, %arg7: memref<128x128xbf16, #tpu.memory_space<vmem>>, %arg8: memref<1x128xf32, #tpu.memory_space<vmem>>, %arg9: memref<8x128xf32, #tpu.memory_space<vmem>>) attributes {dimension_semantics = [], scalar_prefetch = 0 : i64, scratch_operands = 0 : i64, tpu.core_type = #tpu.core_type<tc>} {
    %c0 = arith.constant 0 : index
    %c0_0 = arith.constant 0 : index
    %0 = vector.load %arg1[%c0, %c0_0] : memref<256x128xbf16, #tpu.memory_space<vmem>>, vector<256x128xbf16>
    %c0_1 = arith.constant 0 : index
    %c0_2 = arith.constant 0 : index
    %1 = vector.load %arg0[%c0_1, %c0_2] : memref<128x1024xbf16, #tpu.memory_space<vmem>>, vector<128x256xbf16>
    %cst = arith.constant dense<0.000000e+00> : vector<128x128xf32>
    %2 = tpu.matmul %1, %0, %cst {dimension_numbers = #tpu.dot_dimension_numbers<[1], [0], [0], [1], [0, 0, 1, 1], [], []>} : vector<128x256xbf16>, vector<256x128xbf16>, vector<128x128xf32> -> vector<128x128xf32>
    %c0_3 = arith.constant 0 : index
    %c256 = arith.constant 256 : index
    %3 = vector.load %arg0[%c0_3, %c256] : memref<128x1024xbf16, #tpu.memory_space<vmem>>, vector<128x256xbf16>
    %cst_4 = arith.constant dense<0.000000e+00> : vector<128x128xf32>
    %4 = tpu.matmul %3, %0, %cst_4 {dimension_numbers = #tpu.dot_dimension_numbers<[1], [0], [0], [1], [0, 0, 1, 1], [], []>} : vector<128x256xbf16>, vector<256x128xbf16>, vector<128x128xf32> -> vector<128x128xf32>
    %5 = arith.maximumf %2, %4 : vector<128x128xf32>
    %c0_5 = arith.constant 0 : index
    %c512 = arith.constant 512 : index
    %6 = vector.load %arg0[%c0_5, %c512] : memref<128x1024xbf16, #tpu.memory_space<vmem>>, vector<128x256xbf16>
    %cst_6 = arith.constant dense<0.000000e+00> : vector<128x128xf32>
    %7 = tpu.matmul %6, %0, %cst_6 {dimension_numbers = #tpu.dot_dimension_numbers<[1], [0], [0], [1], [0, 0, 1, 1], [], []>} : vector<128x256xbf16>, vector<256x128xbf16>, vector<128x128xf32> -> vector<128x128xf32>
    %8 = arith.maximumf %5, %7 : vector<128x128xf32>
    %c0_7 = arith.constant 0 : index
    %c768 = arith.constant 768 : index
    %9 = vector.load %arg0[%c0_7, %c768] : memref<128x1024xbf16, #tpu.memory_space<vmem>>, vector<128x256xbf16>
    %cst_8 = arith.constant dense<0.000000e+00> : vector<128x128xf32>
    %10 = tpu.matmul %9, %0, %cst_8 {dimension_numbers = #tpu.dot_dimension_numbers<[1], [0], [0], [1], [0, 0, 1, 1], [], []>} : vector<128x256xbf16>, vector<256x128xbf16>, vector<128x128xf32> -> vector<128x128xf32>
    %11 = arith.maximumf %8, %10 : vector<128x128xf32>
    %c0_9 = arith.constant 0 : index
    %c0_10 = arith.constant 0 : index
    %12 = vector.load %arg2[%c0_9, %c0_10] : memref<1x128xf32, #tpu.memory_space<vmem>>, vector<1x128xf32>
    %13 = vector.broadcast %12 : vector<1x128xf32> to vector<128x128xf32>
    %14 = arith.addf %11, %13 : vector<128x128xf32>
    %cst_11 = arith.constant 0.000000e+00 : f32
    %15 = vector.broadcast %cst_11 : f32 to vector<128x128xf32>
    %16 = arith.maximumf %14, %15 : vector<128x128xf32>
    %17 = vector.extract_strided_slice %16 {offsets = [0, 0], sizes = [8, 128], strides = [1, 1]} : vector<128x128xf32> to vector<8x128xf32>
    %18 = arith.truncf %17 : vector<8x128xf32> to vector<8x128xbf16>
    %c0_12 = arith.constant 0 : index
    %c0_13 = arith.constant 0 : index
    %c0_14 = arith.constant 0 : index
    %19 = vector.load %arg3[%c0_12, %c0_13, %c0_14] : memref<16x128x128xbf16, #tpu.memory_space<vmem>>, vector<1x128x128xbf16>
    %20 = vector.shape_cast %19 : vector<1x128x128xbf16> to vector<128x128xbf16>
    %cst_15 = arith.constant dense<0.000000e+00> : vector<8x128xf32>
    %21 = tpu.matmul %18, %20, %cst_15 {dimension_numbers = #tpu.dot_dimension_numbers<[1], [0], [0], [1], [0, 0, 1, 1], [], []>} : vector<8x128xbf16>, vector<128x128xbf16>, vector<8x128xf32> -> vector<8x128xf32>
    %22 = vector.extract_strided_slice %16 {offsets = [8, 0], sizes = [8, 128], strides = [1, 1]} : vector<128x128xf32> to vector<8x128xf32>
    %23 = arith.truncf %22 : vector<8x128xf32> to vector<8x128xbf16>
    %c1 = arith.constant 1 : index
    %c0_16 = arith.constant 0 : index
    %c0_17 = arith.constant 0 : index
    %24 = vector.load %arg3[%c1, %c0_16, %c0_17] : memref<16x128x128xbf16, #tpu.memory_space<vmem>>, vector<1x128x128xbf16>
    %25 = vector.shape_cast %24 : vector<1x128x128xbf16> to vector<128x128xbf16>
    %cst_18 = arith.constant dense<0.000000e+00> : vector<8x128xf32>
    %26 = tpu.matmul %23, %25, %cst_18 {dimension_numbers = #tpu.dot_dimension_numbers<[1], [0], [0], [1], [0, 0, 1, 1], [], []>} : vector<8x128xbf16>, vector<128x128xbf16>, vector<8x128xf32> -> vector<8x128xf32>
    %27 = arith.addf %21, %26 : vector<8x128xf32>
    %28 = vector.extract_strided_slice %16 {offsets = [16, 0], sizes = [8, 128], strides = [1, 1]} : vector<128x128xf32> to vector<8x128xf32>
    %29 = arith.truncf %28 : vector<8x128xf32> to vector<8x128xbf16>
    %c2 = arith.constant 2 : index
    %c0_19 = arith.constant 0 : index
    %c0_20 = arith.constant 0 : index
    %30 = vector.load %arg3[%c2, %c0_19, %c0_20] : memref<16x128x128xbf16, #tpu.memory_space<vmem>>, vector<1x128x128xbf16>
    %31 = vector.shape_cast %30 : vector<1x128x128xbf16> to vector<128x128xbf16>
    %cst_21 = arith.constant dense<0.000000e+00> : vector<8x128xf32>
    %32 = tpu.matmul %29, %31, %cst_21 {dimension_numbers = #tpu.dot_dimension_numbers<[1], [0], [0], [1], [0, 0, 1, 1], [], []>} : vector<8x128xbf16>, vector<128x128xbf16>, vector<8x128xf32> -> vector<8x128xf32>
    %33 = arith.addf %27, %32 : vector<8x128xf32>
    %34 = vector.extract_strided_slice %16 {offsets = [24, 0], sizes = [8, 128], strides = [1, 1]} : vector<128x128xf32> to vector<8x128xf32>
    %35 = arith.truncf %34 : vector<8x128xf32> to vector<8x128xbf16>
    %c3 = arith.constant 3 : index
    %c0_22 = arith.constant 0 : index
    %c0_23 = arith.constant 0 : index
    %36 = vector.load %arg3[%c3, %c0_22, %c0_23] : memref<16x128x128xbf16, #tpu.memory_space<vmem>>, vector<1x128x128xbf16>
    %37 = vector.shape_cast %36 : vector<1x128x128xbf16> to vector<128x128xbf16>
    %cst_24 = arith.constant dense<0.000000e+00> : vector<8x128xf32>
    %38 = tpu.matmul %35, %37, %cst_24 {dimension_numbers = #tpu.dot_dimension_numbers<[1], [0], [0], [1], [0, 0, 1, 1], [], []>} : vector<8x128xbf16>, vector<128x128xbf16>, vector<8x128xf32> -> vector<8x128xf32>
    %39 = arith.addf %33, %38 : vector<8x128xf32>
    %40 = vector.extract_strided_slice %16 {offsets = [32, 0], sizes = [8, 128], strides = [1, 1]} : vector<128x128xf32> to vector<8x128xf32>
    %41 = arith.truncf %40 : vector<8x128xf32> to vector<8x128xbf16>
    %c4 = arith.constant 4 : index
    %c0_25 = arith.constant 0 : index
    %c0_26 = arith.constant 0 : index
    %42 = vector.load %arg3[%c4, %c0_25, %c0_26] : memref<16x128x128xbf16, #tpu.memory_space<vmem>>, vector<1x128x128xbf16>
    %43 = vector.shape_cast %42 : vector<1x128x128xbf16> to vector<128x128xbf16>
    %cst_27 = arith.constant dense<0.000000e+00> : vector<8x128xf32>
    %44 = tpu.matmul %41, %43, %cst_27 {dimension_numbers = #tpu.dot_dimension_numbers<[1], [0], [0], [1], [0, 0, 1, 1], [], []>} : vector<8x128xbf16>, vector<128x128xbf16>, vector<8x128xf32> -> vector<8x128xf32>
    %45 = arith.addf %39, %44 : vector<8x128xf32>
    %46 = vector.extract_strided_slice %16 {offsets = [40, 0], sizes = [8, 128], strides = [1, 1]} : vector<128x128xf32> to vector<8x128xf32>
    %47 = arith.truncf %46 : vector<8x128xf32> to vector<8x128xbf16>
    %c5 = arith.constant 5 : index
    %c0_28 = arith.constant 0 : index
    %c0_29 = arith.constant 0 : index
    %48 = vector.load %arg3[%c5, %c0_28, %c0_29] : memref<16x128x128xbf16, #tpu.memory_space<vmem>>, vector<1x128x128xbf16>
    %49 = vector.shape_cast %48 : vector<1x128x128xbf16> to vector<128x128xbf16>
    %cst_30 = arith.constant dense<0.000000e+00> : vector<8x128xf32>
    %50 = tpu.matmul %47, %49, %cst_30 {dimension_numbers = #tpu.dot_dimension_numbers<[1], [0], [0], [1], [0, 0, 1, 1], [], []>} : vector<8x128xbf16>, vector<128x128xbf16>, vector<8x128xf32> -> vector<8x128xf32>
    %51 = arith.addf %45, %50 : vector<8x128xf32>
    %52 = vector.extract_strided_slice %16 {offsets = [48, 0], sizes = [8, 128], strides = [1, 1]} : vector<128x128xf32> to vector<8x128xf32>
    %53 = arith.truncf %52 : vector<8x128xf32> to vector<8x128xbf16>
    %c6 = arith.constant 6 : index
    %c0_31 = arith.constant 0 : index
    %c0_32 = arith.constant 0 : index
    %54 = vector.load %arg3[%c6, %c0_31, %c0_32] : memref<16x128x128xbf16, #tpu.memory_space<vmem>>, vector<1x128x128xbf16>
    %55 = vector.shape_cast %54 : vector<1x128x128xbf16> to vector<128x128xbf16>
    %cst_33 = arith.constant dense<0.000000e+00> : vector<8x128xf32>
    %56 = tpu.matmul %53, %55, %cst_33 {dimension_numbers = #tpu.dot_dimension_numbers<[1], [0], [0], [1], [0, 0, 1, 1], [], []>} : vector<8x128xbf16>, vector<128x128xbf16>, vector<8x128xf32> -> vector<8x128xf32>
    %57 = arith.addf %51, %56 : vector<8x128xf32>
    %58 = vector.extract_strided_slice %16 {offsets = [56, 0], sizes = [8, 128], strides = [1, 1]} : vector<128x128xf32> to vector<8x128xf32>
    %59 = arith.truncf %58 : vector<8x128xf32> to vector<8x128xbf16>
    %c7 = arith.constant 7 : index
    %c0_34 = arith.constant 0 : index
    %c0_35 = arith.constant 0 : index
    %60 = vector.load %arg3[%c7, %c0_34, %c0_35] : memref<16x128x128xbf16, #tpu.memory_space<vmem>>, vector<1x128x128xbf16>
    %61 = vector.shape_cast %60 : vector<1x128x128xbf16> to vector<128x128xbf16>
    %cst_36 = arith.constant dense<0.000000e+00> : vector<8x128xf32>
    %62 = tpu.matmul %59, %61, %cst_36 {dimension_numbers = #tpu.dot_dimension_numbers<[1], [0], [0], [1], [0, 0, 1, 1], [], []>} : vector<8x128xbf16>, vector<128x128xbf16>, vector<8x128xf32> -> vector<8x128xf32>
    %63 = arith.addf %57, %62 : vector<8x128xf32>
    %64 = vector.extract_strided_slice %16 {offsets = [64, 0], sizes = [8, 128], strides = [1, 1]} : vector<128x128xf32> to vector<8x128xf32>
    %65 = arith.truncf %64 : vector<8x128xf32> to vector<8x128xbf16>
    %c8 = arith.constant 8 : index
    %c0_37 = arith.constant 0 : index
    %c0_38 = arith.constant 0 : index
    %66 = vector.load %arg3[%c8, %c0_37, %c0_38] : memref<16x128x128xbf16, #tpu.memory_space<vmem>>, vector<1x128x128xbf16>
    %67 = vector.shape_cast %66 : vector<1x128x128xbf16> to vector<128x128xbf16>
    %cst_39 = arith.constant dense<0.000000e+00> : vector<8x128xf32>
    %68 = tpu.matmul %65, %67, %cst_39 {dimension_numbers = #tpu.dot_dimension_numbers<[1], [0], [0], [1], [0, 0, 1, 1], [], []>} : vector<8x128xbf16>, vector<128x128xbf16>, vector<8x128xf32> -> vector<8x128xf32>
    %69 = arith.addf %63, %68 : vector<8x128xf32>
    %70 = vector.extract_strided_slice %16 {offsets = [72, 0], sizes = [8, 128], strides = [1, 1]} : vector<128x128xf32> to vector<8x128xf32>
    %71 = arith.truncf %70 : vector<8x128xf32> to vector<8x128xbf16>
    %c9 = arith.constant 9 : index
    %c0_40 = arith.constant 0 : index
    %c0_41 = arith.constant 0 : index
    %72 = vector.load %arg3[%c9, %c0_40, %c0_41] : memref<16x128x128xbf16, #tpu.memory_space<vmem>>, vector<1x128x128xbf16>
    %73 = vector.shape_cast %72 : vector<1x128x128xbf16> to vector<128x128xbf16>
    %cst_42 = arith.constant dense<0.000000e+00> : vector<8x128xf32>
    %74 = tpu.matmul %71, %73, %cst_42 {dimension_numbers = #tpu.dot_dimension_numbers<[1], [0], [0], [1], [0, 0, 1, 1], [], []>} : vector<8x128xbf16>, vector<128x128xbf16>, vector<8x128xf32> -> vector<8x128xf32>
    %75 = arith.addf %69, %74 : vector<8x128xf32>
    %76 = vector.extract_strided_slice %16 {offsets = [80, 0], sizes = [8, 128], strides = [1, 1]} : vector<128x128xf32> to vector<8x128xf32>
    %77 = arith.truncf %76 : vector<8x128xf32> to vector<8x128xbf16>
    %c10 = arith.constant 10 : index
    %c0_43 = arith.constant 0 : index
    %c0_44 = arith.constant 0 : index
    %78 = vector.load %arg3[%c10, %c0_43, %c0_44] : memref<16x128x128xbf16, #tpu.memory_space<vmem>>, vector<1x128x128xbf16>
    %79 = vector.shape_cast %78 : vector<1x128x128xbf16> to vector<128x128xbf16>
    %cst_45 = arith.constant dense<0.000000e+00> : vector<8x128xf32>
    %80 = tpu.matmul %77, %79, %cst_45 {dimension_numbers = #tpu.dot_dimension_numbers<[1], [0], [0], [1], [0, 0, 1, 1], [], []>} : vector<8x128xbf16>, vector<128x128xbf16>, vector<8x128xf32> -> vector<8x128xf32>
    %81 = arith.addf %75, %80 : vector<8x128xf32>
    %82 = vector.extract_strided_slice %16 {offsets = [88, 0], sizes = [8, 128], strides = [1, 1]} : vector<128x128xf32> to vector<8x128xf32>
    %83 = arith.truncf %82 : vector<8x128xf32> to vector<8x128xbf16>
    %c11 = arith.constant 11 : index
    %c0_46 = arith.constant 0 : index
    %c0_47 = arith.constant 0 : index
    %84 = vector.load %arg3[%c11, %c0_46, %c0_47] : memref<16x128x128xbf16, #tpu.memory_space<vmem>>, vector<1x128x128xbf16>
    %85 = vector.shape_cast %84 : vector<1x128x128xbf16> to vector<128x128xbf16>
    %cst_48 = arith.constant dense<0.000000e+00> : vector<8x128xf32>
    %86 = tpu.matmul %83, %85, %cst_48 {dimension_numbers = #tpu.dot_dimension_numbers<[1], [0], [0], [1], [0, 0, 1, 1], [], []>} : vector<8x128xbf16>, vector<128x128xbf16>, vector<8x128xf32> -> vector<8x128xf32>
    %87 = arith.addf %81, %86 : vector<8x128xf32>
    %88 = vector.extract_strided_slice %16 {offsets = [96, 0], sizes = [8, 128], strides = [1, 1]} : vector<128x128xf32> to vector<8x128xf32>
    %89 = arith.truncf %88 : vector<8x128xf32> to vector<8x128xbf16>
    %c12 = arith.constant 12 : index
    %c0_49 = arith.constant 0 : index
    %c0_50 = arith.constant 0 : index
    %90 = vector.load %arg3[%c12, %c0_49, %c0_50] : memref<16x128x128xbf16, #tpu.memory_space<vmem>>, vector<1x128x128xbf16>
    %91 = vector.shape_cast %90 : vector<1x128x128xbf16> to vector<128x128xbf16>
    %cst_51 = arith.constant dense<0.000000e+00> : vector<8x128xf32>
    %92 = tpu.matmul %89, %91, %cst_51 {dimension_numbers = #tpu.dot_dimension_numbers<[1], [0], [0], [1], [0, 0, 1, 1], [], []>} : vector<8x128xbf16>, vector<128x128xbf16>, vector<8x128xf32> -> vector<8x128xf32>
    %93 = arith.addf %87, %92 : vector<8x128xf32>
    %94 = vector.extract_strided_slice %16 {offsets = [104, 0], sizes = [8, 128], strides = [1, 1]} : vector<128x128xf32> to vector<8x128xf32>
    %95 = arith.truncf %94 : vector<8x128xf32> to vector<8x128xbf16>
    %c13 = arith.constant 13 : index
    %c0_52 = arith.constant 0 : index
    %c0_53 = arith.constant 0 : index
    %96 = vector.load %arg3[%c13, %c0_52, %c0_53] : memref<16x128x128xbf16, #tpu.memory_space<vmem>>, vector<1x128x128xbf16>
    %97 = vector.shape_cast %96 : vector<1x128x128xbf16> to vector<128x128xbf16>
    %cst_54 = arith.constant dense<0.000000e+00> : vector<8x128xf32>
    %98 = tpu.matmul %95, %97, %cst_54 {dimension_numbers = #tpu.dot_dimension_numbers<[1], [0], [0], [1], [0, 0, 1, 1], [], []>} : vector<8x128xbf16>, vector<128x128xbf16>, vector<8x128xf32> -> vector<8x128xf32>
    %99 = arith.addf %93, %98 : vector<8x128xf32>
    %100 = vector.extract_strided_slice %16 {offsets = [112, 0], sizes = [8, 128], strides = [1, 1]} : vector<128x128xf32> to vector<8x128xf32>
    %101 = arith.truncf %100 : vector<8x128xf32> to vector<8x128xbf16>
    %c14 = arith.constant 14 : index
    %c0_55 = arith.constant 0 : index
    %c0_56 = arith.constant 0 : index
    %102 = vector.load %arg3[%c14, %c0_55, %c0_56] : memref<16x128x128xbf16, #tpu.memory_space<vmem>>, vector<1x128x128xbf16>
    %103 = vector.shape_cast %102 : vector<1x128x128xbf16> to vector<128x128xbf16>
    %cst_57 = arith.constant dense<0.000000e+00> : vector<8x128xf32>
    %104 = tpu.matmul %101, %103, %cst_57 {dimension_numbers = #tpu.dot_dimension_numbers<[1], [0], [0], [1], [0, 0, 1, 1], [], []>} : vector<8x128xbf16>, vector<128x128xbf16>, vector<8x128xf32> -> vector<8x128xf32>
    %105 = arith.addf %99, %104 : vector<8x128xf32>
    %106 = vector.extract_strided_slice %16 {offsets = [120, 0], sizes = [8, 128], strides = [1, 1]} : vector<128x128xf32> to vector<8x128xf32>
    %107 = arith.truncf %106 : vector<8x128xf32> to vector<8x128xbf16>
    %c15 = arith.constant 15 : index
    %c0_58 = arith.constant 0 : index
    %c0_59 = arith.constant 0 : index
    %108 = vector.load %arg3[%c15, %c0_58, %c0_59] : memref<16x128x128xbf16, #tpu.memory_space<vmem>>, vector<1x128x128xbf16>
    %109 = vector.shape_cast %108 : vector<1x128x128xbf16> to vector<128x128xbf16>
    %cst_60 = arith.constant dense<0.000000e+00> : vector<8x128xf32>
    %110 = tpu.matmul %107, %109, %cst_60 {dimension_numbers = #tpu.dot_dimension_numbers<[1], [0], [0], [1], [0, 0, 1, 1], [], []>} : vector<8x128xbf16>, vector<128x128xbf16>, vector<8x128xf32> -> vector<8x128xf32>
    %111 = arith.addf %105, %110 : vector<8x128xf32>
    %c0_61 = arith.constant 0 : index
    %c0_62 = arith.constant 0 : index
    %112 = vector.load %arg4[%c0_61, %c0_62] : memref<1x128xf32, #tpu.memory_space<vmem>>, vector<1x128xf32>
    %113 = vector.broadcast %112 : vector<1x128xf32> to vector<8x128xf32>
    %114 = arith.addf %111, %113 : vector<8x128xf32>
    %cst_63 = arith.constant 0.000000e+00 : f32
    %115 = vector.broadcast %cst_63 : f32 to vector<8x128xf32>
    %116 = arith.maximumf %114, %115 : vector<8x128xf32>
    %117 = arith.truncf %116 : vector<8x128xf32> to vector<8x128xbf16>
    %c0_64 = arith.constant 0 : index
    %c0_65 = arith.constant 0 : index
    %118 = vector.load %arg5[%c0_64, %c0_65] : memref<128x128xbf16, #tpu.memory_space<vmem>>, vector<128x128xbf16>
    %cst_66 = arith.constant dense<0.000000e+00> : vector<8x128xf32>
    %119 = tpu.matmul %117, %118, %cst_66 {dimension_numbers = #tpu.dot_dimension_numbers<[1], [0], [0], [1], [0, 0, 1, 1], [], []>} : vector<8x128xbf16>, vector<128x128xbf16>, vector<8x128xf32> -> vector<8x128xf32>
    %c0_67 = arith.constant 0 : index
    %c0_68 = arith.constant 0 : index
    %120 = vector.load %arg6[%c0_67, %c0_68] : memref<1x128xf32, #tpu.memory_space<vmem>>, vector<1x128xf32>
    %121 = vector.broadcast %120 : vector<1x128xf32> to vector<8x128xf32>
    %122 = arith.addf %119, %121 : vector<8x128xf32>
    %cst_69 = arith.constant 0.000000e+00 : f32
    %123 = vector.broadcast %cst_69 : f32 to vector<8x128xf32>
    %124 = arith.maximumf %122, %123 : vector<8x128xf32>
    %125 = arith.truncf %124 : vector<8x128xf32> to vector<8x128xbf16>
    %c0_70 = arith.constant 0 : index
    %c0_71 = arith.constant 0 : index
    %126 = vector.load %arg7[%c0_70, %c0_71] : memref<128x128xbf16, #tpu.memory_space<vmem>>, vector<128x128xbf16>
    %cst_72 = arith.constant dense<0.000000e+00> : vector<8x128xf32>
    %127 = tpu.matmul %125, %126, %cst_72 {dimension_numbers = #tpu.dot_dimension_numbers<[1], [0], [0], [1], [0, 0, 1, 1], [], []>} : vector<8x128xbf16>, vector<128x128xbf16>, vector<8x128xf32> -> vector<8x128xf32>
    %c0_73 = arith.constant 0 : index
    %c0_74 = arith.constant 0 : index
    %128 = vector.load %arg8[%c0_73, %c0_74] : memref<1x128xf32, #tpu.memory_space<vmem>>, vector<1x128xf32>
    %129 = vector.broadcast %128 : vector<1x128xf32> to vector<8x128xf32>
    %130 = arith.addf %127, %129 : vector<8x128xf32>
    %c0_75 = arith.constant 0 : index
    %c0_76 = arith.constant 0 : index
    %131 = vector.load %arg9[%c0_75, %c0_76] : memref<8x128xf32, #tpu.memory_space<vmem>>, vector<8x128xf32>
    tpu.vector_store %arg9[%c0_75, %c0_76], %130 {strides = array<i32>} : memref<8x128xf32, #tpu.memory_space<vmem>>, vector<8x128xf32>,
    return
  }
}

</mosaic_0001>

<bundles_post_ra>
// kernel: lenet5_forward.2
= control target key start
LH: loop header
LB: loop body
LE: loop exit
PB: predicated region body
PF: predicated region fallthrough
CT: control target
= control target key end

     0   :  { %s1252_s12 = smov 0   ;;  %s1405_s0 = inlined_call_operand.vmem [shape: bf16[288,512], index: 0, kind: input, shape index: {}]   ;;  %s1406_s1 = inlined_call_operand.vmem [shape: bf16[128,128], index: 1, kind: input, shape index: {}]   ;;  %s1407_s2 = inlined_call_operand.vmem [shape: f32[1,128], index: 2, kind: input, shape index: {}]   ;;  %s1408_s3 = inlined_call_operand.vmem [shape: bf16[288,128], index: 3, kind: output, shape index: {}]  }
   0x1 LB: > { %s931_s13 = sadd.s32 4294967295, %s1230_s12   ;;  %p935_p0 = scmp.ge.s32.totalorder %s1230_s12, 1  ;;  %s1230_s12 = sphi %s1252_s12, %s13_s12  }
   0x2   : > { %p139_p1 = scmp.lt.s32.totalorder %s1230_s12, 3 }
   0x4   : > { %p140_p2 = pnand %p935_p0, %p139_p1 }
   0x5   : > { %s164_s20 = smul.u32 (!%p140_p2), 18, %s931_s13 }
   0x6   : > { %143 = sbr.rel (%p140_p2) target bundleno = 323 (0x143), region = 32 }
   0x7   : > { %p165_p3 = scmp.lt.s32.totalorder (!%p140_p2), %s164_s20, 35 }
   0xb   : > { %v1125_v0 = vld [vmem:[%s1406_s1 + $0x38] sm:$0xff]  ;;  %v1124_v1 = vld [vmem:[%s1406_s1 + $0x30] sm:$0xff]  ;;  %v1123_v2 = vld [vmem:[%s1406_s1 + $0x28] sm:$0xff]  ;;  %s1410_s20 = smov (!%p165_p3, %s164_s20), 35 }
   0xc   : > { %313 = vmatpush.bf16.msra.mxu0 %v1125_v0  ;;  %439 = vmatpush.bf16.msra.mxu1 %v1125_v0  ;;  %v1122_v3 = vld [vmem:[%s1406_s1 + $0x20] sm:$0xff]  ;;  %v1121_v4 = vld [vmem:[%s1406_s1 + $0x18] sm:$0xff]  ;;  %v1120_v5 = vld [vmem:[%s1406_s1 + $0x10] sm:$0xff]  ;;  %s1117_s27 = sshll.u32 %s1410_s20, 4  ;;  %s938_s10 = sshll.u32 %s1410_s20, 2 }
   0xd   : > { %583 = vmatpush.bf16.msra.mxu2 %v1125_v0  ;;  %727 = vmatpush.bf16.msra.mxu3 %v1125_v0  ;;  %v1119_v6 = vld [vmem:[%s1406_s1 + $0x8] sm:$0xff]  ;;  %s1287_s5 = scalar_lea.vmem %s1405_s0, %s1117_s27  ;;  %v1118_v7 = vld [vmem:[%s1406_s1] sm:$0xff]  ;;  %s1375_s14 = scalar_lea.vmem %s1408_s3, %s938_s10 }
   0xe   : > { %v941_v8 = vld [vmem:[%s1287_s5] sm:$0xf]  ;;  %v1126_v9 = vld [vmem:[%s1287_s5 + $0xc] sm:$0xf0]  ;;  %v1009_v10 = vld [vmem:[%s1287_s5 + $0x4] sm:$0xf] }
   0xf   : > { %v1135_v11 = vld [vmem:[%s1287_s5 + $0x10] sm:$0xf0]  ;;  %v1045_v12 = vld [vmem:[%s1287_s5 + $0x8] sm:$0xf]  ;;  %v1144_v13 = vld [vmem:[%s1287_s5 + $0x14] sm:$0xf0]  ;;  %v942_v16 = vor.u32 %v1126_v9, %v941_v8 }
  0x10   : > { %314 = vmatpush.bf16.msra.mxu0 %v1124_v1  ;;  %440 = vmatpush.bf16.msra.mxu1 %v1124_v1  ;;  %v1081_v14 = vld [vmem:[%s1287_s5 + $0xc] sm:$0xf]  ;;  %v1153_v15 = vld [vmem:[%s1287_s5 + $0x18] sm:$0xf0]  ;;  %v1010_v17 = vor.u32 %v1135_v11, %v1009_v10  ;;  %v1046_v18 = vor.u32 %v1144_v13, %v1045_v12  ;;  %v945_v20 = vld [vmem:[%s1287_s5 + $0x20] sm:$0xf] }
  0x11   : > { %584 = vmatpush.bf16.msra.mxu2 %v1124_v1  ;;  %728 = vmatpush.bf16.msra.mxu3 %v1124_v1  ;;  %v1082_v19 = vor.u32 %v1153_v15, %v1081_v14  ;;  %v1127_v21 = vld [vmem:[%s1287_s5 + $0x2c] sm:$0xf0]  ;;  %v1013_v22 = vld [vmem:[%s1287_s5 + $0x24] sm:$0xf]  ;;  %v1136_v23 = vld [vmem:[%s1287_s5 + $0x30] sm:$0xf0] }
  0x12   : > { %v1049_v24 = vld [vmem:[%s1287_s5 + $0x28] sm:$0xf]  ;;  %v1145_v25 = vld [vmem:[%s1287_s5 + $0x34] sm:$0xf0]  ;;  %v1085_v26 = vld [vmem:[%s1287_s5 + $0x2c] sm:$0xf]  ;;  %v946_v28 = vor.u32 %v1127_v21, %v945_v20  ;;  %v1014_v29 = vor.u32 %v1136_v23, %v1013_v22 }
  0x13   : > { %v1154_v27 = vld [vmem:[%s1287_s5 + $0x38] sm:$0xf0]  ;;  %v1050_v30 = vor.u32 %v1145_v25, %v1049_v24  ;;  %v949_v32 = vld [vmem:[%s1287_s5 + $0x40] sm:$0xf]  ;;  %v1128_v33 = vld [vmem:[%s1287_s5 + $0x4c] sm:$0xf0] }
  0x14   : > { %315 = vmatpush.bf16.msra.mxu0 %v1123_v2  ;;  %441 = vmatpush.bf16.msra.mxu1 %v1123_v2  ;;  %v1086_v31 = vor.u32 %v1154_v27, %v1085_v26  ;;  %v1017_v34 = vld [vmem:[%s1287_s5 + $0x44] sm:$0xf]  ;;  %v1137_v35 = vld [vmem:[%s1287_s5 + $0x50] sm:$0xf0]  ;;  %v1053_v36 = vld [vmem:[%s1287_s5 + $0x48] sm:$0xf]  ;;  %v950_v40 = vor.u32 %v1128_v33, %v949_v32 }
  0x15   : > { %585 = vmatpush.bf16.msra.mxu2 %v1123_v2  ;;  %729 = vmatpush.bf16.msra.mxu3 %v1123_v2  ;;  %v1146_v37 = vld [vmem:[%s1287_s5 + $0x54] sm:$0xf0]  ;;  %v1089_v38 = vld [vmem:[%s1287_s5 + $0x4c] sm:$0xf]  ;;  %v1155_v39 = vld [vmem:[%s1287_s5 + $0x58] sm:$0xf0]  ;;  %v1018_v41 = vor.u32 %v1137_v35, %v1017_v34 }
  0x16   : > { %v1054_v42 = vor.u32 %v1146_v37, %v1053_v36  ;;  %v1090_v43 = vor.u32 %v1155_v39, %v1089_v38  ;;  %v953_v44 = vld [vmem:[%s1287_s5 + $0x60] sm:$0xf]  ;;  %v1129_v45 = vld [vmem:[%s1287_s5 + $0x6c] sm:$0xf0]  ;;  %v1021_v46 = vld [vmem:[%s1287_s5 + $0x64] sm:$0xf] }
  0x17   : > { %v1138_v47 = vld [vmem:[%s1287_s5 + $0x70] sm:$0xf0]  ;;  %v1057_v48 = vld [vmem:[%s1287_s5 + $0x68] sm:$0xf]  ;;  %v1147_v49 = vld [vmem:[%s1287_s5 + $0x74] sm:$0xf0]  ;;  %v954_v52 = vor.u32 %v1129_v45, %v953_v44 }
  0x18   : > { %316 = vmatpush.bf16.msra.mxu0 %v1122_v3  ;;  %442 = vmatpush.bf16.msra.mxu1 %v1122_v3  ;;  %v1093_v50 = vld [vmem:[%s1287_s5 + $0x6c] sm:$0xf]  ;;  %v1156_v51 = vld [vmem:[%s1287_s5 + $0x78] sm:$0xf0]  ;;  %v1022_v53 = vor.u32 %v1138_v47, %v1021_v46  ;;  %v1058_v54 = vor.u32 %v1147_v49, %v1057_v48  ;;  %v957_v56 = vld [vmem:[%s1287_s5 + $0x80] sm:$0xf] }
  0x19   : > { %586 = vmatpush.bf16.msra.mxu2 %v1122_v3  ;;  %730 = vmatpush.bf16.msra.mxu3 %v1122_v3  ;;  %v1094_v55 = vor.u32 %v1156_v51, %v1093_v50  ;;  %v1130_v57 = vld [vmem:[%s1287_s5 + $0x8c] sm:$0xf0]  ;;  %v1025_v58 = vld [vmem:[%s1287_s5 + $0x84] sm:$0xf]  ;;  %v1139_v59 = vld [vmem:[%s1287_s5 + $0x90] sm:$0xf0] }
  0x1a   : > { %v1061_v60 = vld [vmem:[%s1287_s5 + $0x88] sm:$0xf]  ;;  %v1148_v61 = vld [vmem:[%s1287_s5 + $0x94] sm:$0xf0]  ;;  %v1097_v62 = vld [vmem:[%s1287_s5 + $0x8c] sm:$0xf]  ;;  %v958_v0 = vor.u32 %v1130_v57, %v957_v56  ;;  %v1026_v1 = vor.u32 %v1139_v59, %v1025_v58 }
  0x1b   : > { %v1157_v63 = vld [vmem:[%s1287_s5 + $0x98] sm:$0xf0]  ;;  %v1062_v2 = vor.u32 %v1148_v61, %v1061_v60  ;;  %v1065_v8 = vld [vmem:[%s1287_s5 + $0xa8] sm:$0xf]  ;;  %v1149_v9 = vld [vmem:[%s1287_s5 + $0xb4] sm:$0xf0] }
  0x1c   : > { %317 = vmatpush.bf16.msra.mxu0 %v1121_v4  ;;  %443 = vmatpush.bf16.msra.mxu1 %v1121_v4  ;;  %v1098_v3 = vor.u32 %v1157_v63, %v1097_v62  ;;  %v1101_v10 = vld [vmem:[%s1287_s5 + $0xac] sm:$0xf]  ;;  %v1158_v11 = vld [vmem:[%s1287_s5 + $0xb8] sm:$0xf0]  ;;  %v1066_v14 = vor.u32 %v1149_v9, %v1065_v8  ;;  %v1069_v20 = vld [vmem:[%s1287_s5 + $0xc8] sm:$0xf] }
  0x1d   : > { %587 = vmatpush.bf16.msra.mxu2 %v1121_v4  ;;  %731 = vmatpush.bf16.msra.mxu3 %v1121_v4  ;;  %v961_v4 = vld [vmem:[%s1287_s5 + $0xa0] sm:$0xf]  ;;  %v1102_v15 = vor.u32 %v1158_v11, %v1101_v10  ;;  %v1150_v21 = vld [vmem:[%s1287_s5 + $0xd4] sm:$0xf0]  ;;  %v1105_v22 = vld [vmem:[%s1287_s5 + $0xcc] sm:$0xf] }
  0x1e   : > { %v1159_v23 = vld [vmem:[%s1287_s5 + $0xd8] sm:$0xf0]  ;;  %v1070_v26 = vor.u32 %v1150_v21, %v1069_v20  ;;  %v1073_v32 = vld [vmem:[%s1287_s5 + $0xe8] sm:$0xf]  ;;  %v1151_v33 = vld [vmem:[%s1287_s5 + $0xf4] sm:$0xf0] }
  0x1f   : > { %v1106_v27 = vor.u32 %v1159_v23, %v1105_v22  ;;  %v1109_v34 = vld [vmem:[%s1287_s5 + $0xec] sm:$0xf]  ;;  %v1160_v35 = vld [vmem:[%s1287_s5 + $0xf8] sm:$0xf0]  ;;  %v1074_v38 = vor.u32 %v1151_v33, %v1073_v32  ;;  %v1077_v44 = vld [vmem:[%s1287_s5 + $0x108] sm:$0xf] }
  0x20   : > { %318 = vmatpush.bf16.msra.mxu0 %v1120_v5  ;;  %444 = vmatpush.bf16.msra.mxu1 %v1120_v5  ;;  %v1110_v39 = vor.u32 %v1160_v35, %v1109_v34  ;;  %v1152_v45 = vld [vmem:[%s1287_s5 + $0x114] sm:$0xf0]  ;;  %v1113_v46 = vld [vmem:[%s1287_s5 + $0x10c] sm:$0xf]  ;;  %v1161_v47 = vld [vmem:[%s1287_s5 + $0x118] sm:$0xf0] }
  0x21   : > { %588 = vmatpush.bf16.msra.mxu2 %v1120_v5  ;;  %732 = vmatpush.bf16.msra.mxu3 %v1120_v5  ;;  %v1131_v5 = vld [vmem:[%s1287_s5 + $0xac] sm:$0xf0]  ;;  %v1367_v61 = vld [vmem:[%s1407_s2] ss:$0 sm:$0xff] }
  0x22   : > { %v962_v12 = vor.u32 %v1131_v5, %v961_v4 }
  0x24   : > { %319 = vmatpush.bf16.msra.mxu0 %v1119_v6  ;;  %445 = vmatpush.bf16.msra.mxu1 %v1119_v6 }
  0x25   : > { %589 = vmatpush.bf16.msra.mxu2 %v1119_v6  ;;  %733 = vmatpush.bf16.msra.mxu3 %v1119_v6  ;;  %v1029_v6 = vld [vmem:[%s1287_s5 + $0xa4] sm:$0xf] }
  0x28   : > { %320 = vmatpush.bf16.msra.mxu0 %v1118_v7  ;;  %446 = vmatpush.bf16.msra.mxu1 %v1118_v7 }
  0x29   : > { %590 = vmatpush.bf16.msra.mxu2 %v1118_v7  ;;  %734 = vmatpush.bf16.msra.mxu3 %v1118_v7  ;;  %v1140_v7 = vld [vmem:[%s1287_s5 + $0xb0] sm:$0xf0] }
  0x2a   : > { %v1030_v13 = vor.u32 %v1140_v7, %v1029_v6 }
  0x2b   : > { %321 = vmatmul.bf16.vlgmr.msra.gmra.mxu0 %v942_v16  ;;  %447 = vmatmul.bf16.vlgmr.msra.gmra.mxu1 %v1010_v17  ;;  %v965_v16 = vld [vmem:[%s1287_s5 + $0xc0] sm:$0xf]  ;;  %v1132_v17 = vld [vmem:[%s1287_s5 + $0xcc] sm:$0xf0] }
  0x2c   : > { %591 = vmatmul.bf16.vlgmr.msra.gmra.mxu2 %v1046_v18  ;;  %735 = vmatmul.bf16.vlgmr.msra.gmra.mxu3 %v1082_v19  ;;  %v1033_v18 = vld [vmem:[%s1287_s5 + $0xc4] sm:$0xf]  ;;  %v1141_v19 = vld [vmem:[%s1287_s5 + $0xd0] sm:$0xf0]  ;;  %v966_v24 = vor.u32 %v1132_v17, %v965_v16 }
  0x2d   : > { %v1034_v25 = vor.u32 %v1141_v19, %v1033_v18 }
  0x3b   : > { %326 = vmatmul.bf16.gmra.mxu0 %v946_v28  ;;  %452 = vmatmul.bf16.gmra.mxu1 %v1014_v29  ;;  %v969_v28 = vld [vmem:[%s1287_s5 + $0xe0] sm:$0xf]  ;;  %v1133_v29 = vld [vmem:[%s1287_s5 + $0xec] sm:$0xf0] }
  0x3c   : > { %596 = vmatmul.bf16.gmra.mxu2 %v1050_v30  ;;  %740 = vmatmul.bf16.gmra.mxu3 %v1086_v31  ;;  %v1037_v30 = vld [vmem:[%s1287_s5 + $0xe4] sm:$0xf]  ;;  %v1142_v31 = vld [vmem:[%s1287_s5 + $0xf0] sm:$0xf0]  ;;  %v970_v36 = vor.u32 %v1133_v29, %v969_v28 }
  0x3d   : > { %v1038_v37 = vor.u32 %v1142_v31, %v1037_v30 }
  0x4b   : > { %331 = vmatmul.bf16.gmra.mxu0 %v950_v40  ;;  %457 = vmatmul.bf16.gmra.mxu1 %v1018_v41  ;;  %v973_v40 = vld [vmem:[%s1287_s5 + $0x100] sm:$0xf]  ;;  %v1134_v41 = vld [vmem:[%s1287_s5 + $0x10c] sm:$0xf0] }
  0x4c   : > { %601 = vmatmul.bf16.gmra.mxu2 %v1054_v42  ;;  %745 = vmatmul.bf16.gmra.mxu3 %v1090_v43  ;;  %v1041_v42 = vld [vmem:[%s1287_s5 + $0x104] sm:$0xf]  ;;  %v1143_v43 = vld [vmem:[%s1287_s5 + $0x110] sm:$0xf0]  ;;  %v974_v48 = vor.u32 %v1134_v41, %v973_v40 }
  0x4d   : > { %v1042_v49 = vor.u32 %v1143_v43, %v1041_v42 }
  0x5b   : > { %336 = vmatmul.bf16.gmra.mxu0 %v954_v52  ;;  %462 = vmatmul.bf16.gmra.mxu1 %v1022_v53  ;;  %v1078_v52 = vor.u32 %v1152_v45, %v1077_v44  ;;  %v1114_v53 = vor.u32 %v1161_v47, %v1113_v46 }
  0x5c   : > { %606 = vmatmul.bf16.gmra.mxu2 %v1058_v54  ;;  %750 = vmatmul.bf16.gmra.mxu3 %v1094_v55 }
  0x6b   : > { %341 = vmatmul.bf16.gmra.mxu0 %v958_v0  ;;  %467 = vmatmul.bf16.gmra.mxu1 %v1026_v1 }
  0x6c   : > { %611 = vmatmul.bf16.gmra.mxu2 %v1062_v2  ;;  %755 = vmatmul.bf16.gmra.mxu3 %v1098_v3 }
  0x7b   : > { %346 = vmatmul.bf16.gmra.mxu0 %v962_v12  ;;  %472 = vmatmul.bf16.gmra.mxu1 %v1030_v13 }
  0x7c   : > { %616 = vmatmul.bf16.gmra.mxu2 %v1066_v14  ;;  %760 = vmatmul.bf16.gmra.mxu3 %v1102_v15 }
  0x8b   : > { %351 = vmatmul.bf16.gmra.mxu0 %v966_v24  ;;  %477 = vmatmul.bf16.gmra.mxu1 %v1034_v25 }
  0x8c   : > { %621 = vmatmul.bf16.gmra.mxu2 %v1070_v26  ;;  %765 = vmatmul.bf16.gmra.mxu3 %v1106_v27 }
  0x9b   : > { %356 = vmatmul.bf16.gmra.mxu0 %v970_v36  ;;  %482 = vmatmul.bf16.gmra.mxu1 %v1038_v37 }
  0x9c   : > { %626 = vmatmul.bf16.gmra.mxu2 %v1074_v38  ;;  %770 = vmatmul.bf16.gmra.mxu3 %v1110_v39 }
  0xa8   : > { %v322_v50 = vpop.f32.mrf.mxu0  ;;  %v448_v51 = vpop.f32.mrf.mxu1 }
  0xa9   : > { %v493_v54 = vmax.f32 %v322_v50, %v448_v51 }
  0xab   : > { %361 = vmatmul.bf16.gmra.mxu0 %v974_v48  ;;  %487 = vmatmul.bf16.gmra.mxu1 %v1042_v49 }
  0xac   : > { %631 = vmatmul.bf16.gmra.mxu2 %v1078_v52  ;;  %775 = vmatmul.bf16.gmra.mxu3 %v1114_v53 }
  0xaf   : > { %v592_v55 = vpop.f32.mrf.mxu2  ;;  %v736_v56 = vpop.f32.mrf.mxu3 }
  0xb0   : > { %v324_v57 = vpop.f32.mrf.mxu0  ;;  %v450_v58 = vpop.f32.mrf.mxu1  ;;  %v637_v59 = vmax.f32 %v493_v54, %v592_v55 }
  0xb1   : > { %v494_v62 = vmax.f32 %v324_v57, %v450_v58 }
  0xb2   : > { %v781_v60 = vmax.f32 %v637_v59, %v736_v56 }
  0xb4   : > { %v803_v4 = vadd.f32 %v1367_v61, %v781_v60 }
  0xb6   : > { %v821_v7 = vmax.f32 %v803_v4, 0.0 }
  0xb7   : > { %v594_v63 = vpop.f32.mrf.mxu2  ;;  %v738_v0 = vpop.f32.mrf.mxu3 }
  0xb8   : > { %v638_v1 = vmax.f32 %v494_v62, %v594_v63  ;;  %v327_v2 = vpop.f32.mrf.mxu0  ;;  %v453_v3 = vpop.f32.mrf.mxu1 }
  0xb9   : > { %v495_v9 = vmax.f32 %v327_v2, %v453_v3 }
  0xba   : > { %v782_v5 = vmax.f32 %v638_v1, %v738_v0 }
  0xbc   : > { %v804_v6 = vadd.f32 %v1367_v61, %v782_v5 }
  0xbe   : > { %v822_v8 = vmax.f32 %v804_v6, 0.0 }
  0xbf   : > { %v597_v10 = vpop.f32.mrf.mxu2  ;;  %v741_v11 = vpop.f32.mrf.mxu3 }
  0xc0   : > { %v1165_v12 = vpack.c.bf16 %v822_v8, %v821_v7  ;;  %v329_v13 = vpop.f32.mrf.mxu0  ;;  %v455_v14 = vpop.f32.mrf.mxu1  ;;  %v639_v15 = vmax.f32 %v495_v9, %v597_v10 }
  0xc1   : > { %v496_v17 = vmax.f32 %v329_v13, %v455_v14 }
  0xc2   : > { %1166 = vst [vmem:[%s1375_s14] sm:$0xff] %v1165_v12   ;;  %v783_v16 = vmax.f32 %v639_v15, %v741_v11 }
  0xc4   : > { %v805_v23 = vadd.f32 %v1367_v61, %v783_v16 }
  0xc6   : > { %v823_v26 = vmax.f32 %v805_v23, 0.0 }
  0xc7   : > { %v599_v18 = vpop.f32.mrf.mxu2  ;;  %v743_v19 = vpop.f32.mrf.mxu3 }
  0xc8   : > { %v640_v20 = vmax.f32 %v496_v17, %v599_v18  ;;  %v332_v21 = vpop.f32.mrf.mxu0  ;;  %v458_v22 = vpop.f32.mrf.mxu1 }
  0xc9   : > { %v497_v28 = vmax.f32 %v332_v21, %v458_v22 }
  0xca   : > { %v784_v24 = vmax.f32 %v640_v20, %v743_v19 }
  0xcc   : > { %v806_v25 = vadd.f32 %v1367_v61, %v784_v24 }
  0xce   : > { %v824_v27 = vmax.f32 %v806_v25, 0.0 }
  0xcf   : > { %v602_v29 = vpop.f32.mrf.mxu2  ;;  %v746_v30 = vpop.f32.mrf.mxu3 }
  0xd0   : > { %v1170_v31 = vpack.c.bf16 %v824_v27, %v823_v26  ;;  %v334_v32 = vpop.f32.mrf.mxu0  ;;  %v460_v33 = vpop.f32.mrf.mxu1  ;;  %v641_v34 = vmax.f32 %v497_v28, %v602_v29 }
  0xd1   : > { %v498_v36 = vmax.f32 %v334_v32, %v460_v33 }
  0xd2   : > { %1207 = vst [vmem:[%s1375_s14 + $0x8] sm:$0xff] %v1170_v31   ;;  %v785_v35 = vmax.f32 %v641_v34, %v746_v30 }
  0xd4   : > { %v807_v42 = vadd.f32 %v1367_v61, %v785_v35 }
  0xd6   : > { %v825_v45 = vmax.f32 %v807_v42, 0.0 }
  0xd7   : > { %v604_v37 = vpop.f32.mrf.mxu2  ;;  %v748_v38 = vpop.f32.mrf.mxu3 }
  0xd8   : > { %v642_v39 = vmax.f32 %v498_v36, %v604_v37  ;;  %v337_v40 = vpop.f32.mrf.mxu0  ;;  %v463_v41 = vpop.f32.mrf.mxu1 }
  0xd9   : > { %v499_v47 = vmax.f32 %v337_v40, %v463_v41 }
  0xda   : > { %v786_v43 = vmax.f32 %v642_v39, %v748_v38 }
  0xdc   : > { %v808_v44 = vadd.f32 %v1367_v61, %v786_v43 }
  0xde   : > { %v826_v46 = vmax.f32 %v808_v44, 0.0 }
  0xdf   : > { %v607_v48 = vpop.f32.mrf.mxu2  ;;  %v751_v49 = vpop.f32.mrf.mxu3 }
  0xe0   : > { %v1175_v50 = vpack.c.bf16 %v826_v46, %v825_v45  ;;  %v339_v51 = vpop.f32.mrf.mxu0  ;;  %v465_v52 = vpop.f32.mrf.mxu1  ;;  %v643_v53 = vmax.f32 %v499_v47, %v607_v48 }
  0xe1   : > { %v500_v55 = vmax.f32 %v339_v51, %v465_v52 }
  0xe2   : > { %1208 = vst [vmem:[%s1375_s14 + $0x10] sm:$0xff] %v1175_v50   ;;  %v787_v54 = vmax.f32 %v643_v53, %v751_v49 }
  0xe4   : > { %v809_v62 = vadd.f32 %v1367_v61, %v787_v54 }
  0xe6   : > { %v827_v1 = vmax.f32 %v809_v62, 0.0 }
  0xe7   : > { %v609_v56 = vpop.f32.mrf.mxu2  ;;  %v753_v57 = vpop.f32.mrf.mxu3 }
  0xe8   : > { %v644_v58 = vmax.f32 %v500_v55, %v609_v56  ;;  %v342_v59 = vpop.f32.mrf.mxu0  ;;  %v468_v60 = vpop.f32.mrf.mxu1 }
  0xe9   : > { %v501_v3 = vmax.f32 %v342_v59, %v468_v60 }
  0xea   : > { %v788_v63 = vmax.f32 %v644_v58, %v753_v57 }
  0xec   : > { %v810_v0 = vadd.f32 %v1367_v61, %v788_v63 }
  0xee   : > { %v828_v2 = vmax.f32 %v810_v0, 0.0 }
  0xef   : > { %v612_v4 = vpop.f32.mrf.mxu2  ;;  %v756_v5 = vpop.f32.mrf.mxu3 }
  0xf0   : > { %v1180_v6 = vpack.c.bf16 %v828_v2, %v827_v1  ;;  %v344_v7 = vpop.f32.mrf.mxu0  ;;  %v470_v8 = vpop.f32.mrf.mxu1  ;;  %v645_v9 = vmax.f32 %v501_v3, %v612_v4 }
  0xf1   : > { %v502_v11 = vmax.f32 %v344_v7, %v470_v8 }
  0xf2   : > { %1209 = vst [vmem:[%s1375_s14 + $0x18] sm:$0xff] %v1180_v6   ;;  %v789_v10 = vmax.f32 %v645_v9, %v756_v5 }
  0xf4   : > { %v811_v17 = vadd.f32 %v1367_v61, %v789_v10 }
  0xf6   : > { %v829_v20 = vmax.f32 %v811_v17, 0.0 }
  0xf7   : > { %v614_v12 = vpop.f32.mrf.mxu2  ;;  %v758_v13 = vpop.f32.mrf.mxu3 }
  0xf8   : > { %v646_v14 = vmax.f32 %v502_v11, %v614_v12  ;;  %v347_v15 = vpop.f32.mrf.mxu0  ;;  %v473_v16 = vpop.f32.mrf.mxu1 }
  0xf9   : > { %v503_v22 = vmax.f32 %v347_v15, %v473_v16 }
  0xfa   : > { %v790_v18 = vmax.f32 %v646_v14, %v758_v13 }
  0xfc   : > { %v812_v19 = vadd.f32 %v1367_v61, %v790_v18 }
  0xfe   : > { %v830_v21 = vmax.f32 %v812_v19, 0.0 }
  0xff   : > { %v617_v23 = vpop.f32.mrf.mxu2  ;;  %v761_v24 = vpop.f32.mrf.mxu3 }
 0x100   : > { %v1185_v25 = vpack.c.bf16 %v830_v21, %v829_v20  ;;  %v349_v26 = vpop.f32.mrf.mxu0  ;;  %v475_v27 = vpop.f32.mrf.mxu1  ;;  %v647_v28 = vmax.f32 %v503_v22, %v617_v23 }
 0x101   : > { %v504_v30 = vmax.f32 %v349_v26, %v475_v27 }
 0x102   : > { %1210 = vst [vmem:[%s1375_s14 + $0x20] sm:$0xff] %v1185_v25   ;;  %v791_v29 = vmax.f32 %v647_v28, %v761_v24 }
 0x104   : > { %v813_v36 = vadd.f32 %v1367_v61, %v791_v29 }
 0x106   : > { %v831_v39 = vmax.f32 %v813_v36, 0.0 }
 0x107   : > { %v619_v31 = vpop.f32.mrf.mxu2  ;;  %v763_v32 = vpop.f32.mrf.mxu3 }
 0x108   : > { %v648_v33 = vmax.f32 %v504_v30, %v619_v31  ;;  %v352_v34 = vpop.f32.mrf.mxu0  ;;  %v478_v35 = vpop.f32.mrf.mxu1 }
 0x109   : > { %v505_v41 = vmax.f32 %v352_v34, %v478_v35 }
 0x10a   : > { %v792_v37 = vmax.f32 %v648_v33, %v763_v32 }
 0x10c   : > { %v814_v38 = vadd.f32 %v1367_v61, %v792_v37 }
 0x10e   : > { %v832_v40 = vmax.f32 %v814_v38, 0.0 }
 0x10f   : > { %v622_v42 = vpop.f32.mrf.mxu2  ;;  %v766_v43 = vpop.f32.mrf.mxu3 }
 0x110   : > { %v1190_v44 = vpack.c.bf16 %v832_v40, %v831_v39  ;;  %v354_v45 = vpop.f32.mrf.mxu0  ;;  %v480_v46 = vpop.f32.mrf.mxu1  ;;  %v649_v47 = vmax.f32 %v505_v41, %v622_v42 }
 0x111   : > { %v506_v49 = vmax.f32 %v354_v45, %v480_v46 }
 0x112   : > { %1211 = vst [vmem:[%s1375_s14 + $0x28] sm:$0xff] %v1190_v44   ;;  %v793_v48 = vmax.f32 %v649_v47, %v766_v43 }
 0x114   : > { %v815_v55 = vadd.f32 %v1367_v61, %v793_v48 }
 0x116   : > { %v833_v58 = vmax.f32 %v815_v55, 0.0 }
 0x117   : > { %v624_v50 = vpop.f32.mrf.mxu2  ;;  %v768_v51 = vpop.f32.mrf.mxu3 }
 0x118   : > { %v650_v52 = vmax.f32 %v506_v49, %v624_v50  ;;  %v357_v53 = vpop.f32.mrf.mxu0  ;;  %v483_v54 = vpop.f32.mrf.mxu1 }
 0x119   : > { %v507_v60 = vmax.f32 %v357_v53, %v483_v54 }
 0x11a   : > { %v794_v56 = vmax.f32 %v650_v52, %v768_v51 }
 0x11c   : > { %v816_v57 = vadd.f32 %v1367_v61, %v794_v56 }
 0x11e   : > { %v834_v59 = vmax.f32 %v816_v57, 0.0 }
 0x11f   : > { %v627_v62 = vpop.f32.mrf.mxu2  ;;  %v771_v63 = vpop.f32.mrf.mxu3 }
 0x120   : > { %v1195_v0 = vpack.c.bf16 %v834_v59, %v833_v58  ;;  %v359_v1 = vpop.f32.mrf.mxu0  ;;  %v485_v2 = vpop.f32.mrf.mxu1  ;;  %v651_v3 = vmax.f32 %v507_v60, %v627_v62 }
 0x121   : > { %v508_v5 = vmax.f32 %v359_v1, %v485_v2 }
 0x122   : > { %1212 = vst [vmem:[%s1375_s14 + $0x30] sm:$0xff] %v1195_v0   ;;  %v795_v4 = vmax.f32 %v651_v3, %v771_v63 }
 0x124   : > { %v817_v11 = vadd.f32 %v1367_v61, %v795_v4 }
 0x126   : > { %v835_v14 = vmax.f32 %v817_v11, 0.0 }
 0x127   : > { %v629_v6 = vpop.f32.mrf.mxu2  ;;  %v773_v7 = vpop.f32.mrf.mxu3 }
 0x128   : > { %v652_v8 = vmax.f32 %v508_v5, %v629_v6  ;;  %v362_v9 = vpop.f32.mrf.mxu0  ;;  %v488_v10 = vpop.f32.mrf.mxu1 }
 0x129   : > { %v509_v16 = vmax.f32 %v362_v9, %v488_v10 }
 0x12a   : > { %v796_v12 = vmax.f32 %v652_v8, %v773_v7 }
 0x12c   : > { %v818_v13 = vadd.f32 %v1367_v61, %v796_v12 }
 0x12e   : > { %v836_v15 = vmax.f32 %v818_v13, 0.0 }
 0x12f   : > { %v632_v17 = vpop.f32.mrf.mxu2  ;;  %v776_v18 = vpop.f32.mrf.mxu3 }
 0x130   : > { %v1200_v19 = vpack.c.bf16 %v836_v15, %v835_v14  ;;  %v653_v20 = vmax.f32 %v509_v16, %v632_v17  ;;  %v364_v21 = vpop.f32.mrf.mxu0  ;;  %v490_v22 = vpop.f32.mrf.mxu1 }
 0x131   : > { %v510_v24 = vmax.f32 %v364_v21, %v490_v22 }
 0x132   : > { %1213 = vst [vmem:[%s1375_s14 + $0x38] sm:$0xff] %v1200_v19   ;;  %v797_v23 = vmax.f32 %v653_v20, %v776_v18 }
 0x134   : > { %v819_v28 = vadd.f32 %v1367_v61, %v797_v23 }
 0x136   : > { %v837_v31 = vmax.f32 %v819_v28, 0.0 }
 0x137   : > { %v634_v25 = vpop.f32.mrf.mxu2  ;;  %v778_v27 = vpop.f32.mrf.mxu3 }
 0x138   : > { %v654_v26 = vmax.f32 %v510_v24, %v634_v25 }
 0x13a   : > { %v798_v29 = vmax.f32 %v654_v26, %v778_v27 }
 0x13c   : > { %v820_v30 = vadd.f32 %v1367_v61, %v798_v29 }
 0x13e   : > { %v838_v32 = vmax.f32 %v820_v30, 0.0 }
 0x140   : > { %v1205_v33 = vpack.c.bf16 %v838_v32, %v837_v31 }
 0x142   : > { %1214 = vst [vmem:[%s1375_s14 + $0x40] sm:$0xff] %v1205_v33  }
 0x143 PF: > { %s13_s12 = sadd.s32 1, %s1230_s12  }
 0x144   : > { %p10_p4 = scmp.ge.s32.totalorder %s13_s12, 4  }
 0x146   :  { %12 = sbr.rel (!%p10_p4) target bundleno = 1 (0x1), region = 62 }

// kernel: lenet5_forward.3
= control target key start
LH: loop header
LB: loop body
LE: loop exit
PB: predicated region body
PF: predicated region fallthrough
CT: control target
= control target key end

     0   :  { %s5036_s1 = inlined_call_operand.vmem [shape: bf16[256,128], index: 1, kind: input, shape index: {}]   ;;  %s5037_s0 = inlined_call_operand.vmem [shape: bf16[128,1024], index: 0, kind: input, shape index: {}]   ;;  %s5038_s2 = inlined_call_operand.vmem [shape: f32[1,128], index: 2, kind: input, shape index: {}]   ;;  %s5039_s3 = inlined_call_operand.vmem [shape: bf16[16,128,128], index: 3, kind: input, shape index: {}]   ;;  %s5040_s4 = inlined_call_operand.vmem [shape: f32[1,128], index: 4, kind: input, shape index: {}]   ;;  %s5041_s6 = inlined_call_operand.vmem [shape: f32[1,128], index: 6, kind: input, shape index: {}]   ;;  %s5042_s5 = inlined_call_operand.vmem [shape: bf16[128,128], index: 5, kind: input, shape index: {}]   ;;  %s5043_s7 = inlined_call_operand.vmem [shape: bf16[128,128], index: 7, kind: input, shape index: {}]   ;;  %s5044_s8 = inlined_call_operand.vmem [shape: f32[1,128], index: 8, kind: input, shape index: {}]   ;;  %s5045_s9 = inlined_call_operand.vmem [shape: f32[8,128], index: 9, kind: output, shape index: {}]  }
   0x1   :  { %v3890_v0 = vld [vmem:[%s5036_s1 + $0x38] sm:$0xff]  ;;  %v3902_v2 = vld [vmem:[%s5036_s1 + $0x30] sm:$0xff]  ;;  %v3916_v4 = vld [vmem:[%s5036_s1 + $0x28] sm:$0xff] }
   0x2   :  { %v3895_v1 = vld [vmem:[%s5036_s1 + $0x78] sm:$0xff]  ;;  %256 = vmatpush.bf16.msra.mxu0 %v3890_v0  ;;  %v3907_v3 = vld [vmem:[%s5036_s1 + $0x70] sm:$0xff]  ;;  %450 = vmatpush.bf16.msra.mxu2 %v3890_v0  ;;  %v3921_v5 = vld [vmem:[%s5036_s1 + $0x68] sm:$0xff] }
   0x3   :  { %305 = vmatpush.bf16.msra.mxu1 %v3895_v1  ;;  %499 = vmatpush.bf16.msra.mxu3 %v3895_v1  ;;  %v3930_v6 = vld [vmem:[%s5036_s1 + $0x20] sm:$0xff]  ;;  %v3944_v8 = vld [vmem:[%s5036_s1 + $0x18] sm:$0xff]  ;;  %v3958_v10 = vld [vmem:[%s5036_s1 + $0x10] sm:$0xff] }
   0x4   :  { %v3935_v7 = vld [vmem:[%s5036_s1 + $0x60] sm:$0xff]  ;;  %v3949_v9 = vld [vmem:[%s5036_s1 + $0x58] sm:$0xff]  ;;  %v3963_v11 = vld [vmem:[%s5036_s1 + $0x50] sm:$0xff] }
   0x5   :  { %v3972_v12 = vld [vmem:[%s5036_s1 + $0x8] sm:$0xff]  ;;  %v3984_v14 = vld [vmem:[%s5036_s1] sm:$0xff] }
   0x6   :  { %257 = vmatpush.bf16.msra.mxu0 %v3902_v2  ;;  %451 = vmatpush.bf16.msra.mxu2 %v3902_v2  ;;  %v3977_v13 = vld [vmem:[%s5036_s1 + $0x48] sm:$0xff]  ;;  %v3989_v15 = vld [vmem:[%s5036_s1 + $0x40] sm:$0xff] }
   0x7   :  { %306 = vmatpush.bf16.msra.mxu1 %v3907_v3  ;;  %500 = vmatpush.bf16.msra.mxu3 %v3907_v3  ;;  %v2475_v16 = vld [vmem:[%s5037_s0] sm:$0xf]  ;;  %v3625_v18 = vld [vmem:[%s5037_s0 + $0x4] sm:$0xf]  ;;  %v2603_v20 = vld [vmem:[%s5037_s0 + $0x8] sm:$0xf] }
   0x8   :  { %v3626_v17 = vld [vmem:[%s5037_s0 + $0x1c] sm:$0xf0]  ;;  %v2477_v19 = vld [vmem:[%s5037_s0 + $0x20] sm:$0xf0]  ;;  %v3642_v21 = vld [vmem:[%s5037_s0 + $0x24] sm:$0xf0] }
   0x9   :  { %v3641_v22 = vld [vmem:[%s5037_s0 + $0xc] sm:$0xf]  ;;  %v2476_v24 = vor.u32 %v3626_v17, %v2475_v16  ;;  %v2480_v25 = vor.u32 %v3625_v18, %v2477_v19  ;;  %v2604_v26 = vor.u32 %v3642_v21, %v2603_v20  ;;  %v2483_v28 = vld [vmem:[%s5037_s0 + $0x40] sm:$0xf]  ;;  %v3627_v30 = vld [vmem:[%s5037_s0 + $0x44] sm:$0xf] }
   0xa   :  { %258 = vmatpush.bf16.msra.mxu0 %v3916_v4  ;;  %452 = vmatpush.bf16.msra.mxu2 %v3916_v4  ;;  %v2605_v23 = vld [vmem:[%s5037_s0 + $0x28] sm:$0xf0]  ;;  %v3628_v29 = vld [vmem:[%s5037_s0 + $0x5c] sm:$0xf0]  ;;  %v2485_v31 = vld [vmem:[%s5037_s0 + $0x60] sm:$0xf0] }
   0xb   :  { %307 = vmatpush.bf16.msra.mxu1 %v3921_v5  ;;  %501 = vmatpush.bf16.msra.mxu3 %v3921_v5  ;;  %v2608_v27 = vor.u32 %v3641_v22, %v2605_v23  ;;  %v2611_v32 = vld [vmem:[%s5037_s0 + $0x48] sm:$0xf]  ;;  %v3643_v34 = vld [vmem:[%s5037_s0 + $0x4c] sm:$0xf]  ;;  %v2484_v36 = vor.u32 %v3628_v29, %v2483_v28  ;;  %v2488_v37 = vor.u32 %v3627_v30, %v2485_v31  ;;  %v2491_v40 = vld [vmem:[%s5037_s0 + $0x80] sm:$0xf] }
   0xc   :  { %v3644_v33 = vld [vmem:[%s5037_s0 + $0x64] sm:$0xf0]  ;;  %v2613_v35 = vld [vmem:[%s5037_s0 + $0x68] sm:$0xf0]  ;;  %v3630_v41 = vld [vmem:[%s5037_s0 + $0x9c] sm:$0xf0] }
   0xd   :  { %v2612_v38 = vor.u32 %v3644_v33, %v2611_v32  ;;  %v2616_v39 = vor.u32 %v3643_v34, %v2613_v35  ;;  %v3629_v42 = vld [vmem:[%s5037_s0 + $0x84] sm:$0xf]  ;;  %v2619_v44 = vld [vmem:[%s5037_s0 + $0x88] sm:$0xf]  ;;  %v3645_v46 = vld [vmem:[%s5037_s0 + $0x8c] sm:$0xf]  ;;  %v2492_v48 = vor.u32 %v3630_v41, %v2491_v40 }
   0xe   :  { %259 = vmatpush.bf16.msra.mxu0 %v3930_v6  ;;  %453 = vmatpush.bf16.msra.mxu2 %v3930_v6  ;;  %v2493_v43 = vld [vmem:[%s5037_s0 + $0xa0] sm:$0xf0]  ;;  %v3646_v45 = vld [vmem:[%s5037_s0 + $0xa4] sm:$0xf0]  ;;  %v2621_v47 = vld [vmem:[%s5037_s0 + $0xa8] sm:$0xf0] }
   0xf   :  { %308 = vmatpush.bf16.msra.mxu1 %v3935_v7  ;;  %502 = vmatpush.bf16.msra.mxu3 %v3935_v7  ;;  %v2496_v49 = vor.u32 %v3629_v42, %v2493_v43  ;;  %v2620_v50 = vor.u32 %v3646_v45, %v2619_v44  ;;  %v2624_v51 = vor.u32 %v3645_v46, %v2621_v47  ;;  %v2499_v52 = vld [vmem:[%s5037_s0 + $0xc0] sm:$0xf]  ;;  %v3631_v54 = vld [vmem:[%s5037_s0 + $0xc4] sm:$0xf]  ;;  %v2627_v56 = vld [vmem:[%s5037_s0 + $0xc8] sm:$0xf] }
  0x10   :  { %v3632_v53 = vld [vmem:[%s5037_s0 + $0xdc] sm:$0xf0]  ;;  %v2501_v55 = vld [vmem:[%s5037_s0 + $0xe0] sm:$0xf0]  ;;  %v3648_v57 = vld [vmem:[%s5037_s0 + $0xe4] sm:$0xf0] }
  0x11   :  { %v3647_v58 = vld [vmem:[%s5037_s0 + $0xcc] sm:$0xf]  ;;  %v2500_v60 = vor.u32 %v3632_v53, %v2499_v52  ;;  %v2504_v61 = vor.u32 %v3631_v54, %v2501_v55  ;;  %v2628_v62 = vor.u32 %v3648_v57, %v2627_v56  ;;  %v2643_v16 = vld [vmem:[%s5037_s0 + $0x148] sm:$0xf]  ;;  %v2731_v52 = vld [vmem:[%s5037_s0 + $0x18] sm:$0xf] }
  0x12   :  { %260 = vmatpush.bf16.msra.mxu0 %v3944_v8  ;;  %454 = vmatpush.bf16.msra.mxu2 %v3944_v8  ;;  %v2629_v59 = vld [vmem:[%s5037_s0 + $0xe8] sm:$0xf0]  ;;  %v3652_v17 = vld [vmem:[%s5037_s0 + $0x164] sm:$0xf0]  ;;  %v3674_v53 = vld [vmem:[%s5037_s0 + $0x34] sm:$0xf0] }
  0x13   :  { %309 = vmatpush.bf16.msra.mxu1 %v3949_v9  ;;  %503 = vmatpush.bf16.msra.mxu3 %v3949_v9  ;;  %v2632_v63 = vor.u32 %v3647_v58, %v2629_v59  ;;  %v3651_v18 = vld [vmem:[%s5037_s0 + $0x14c] sm:$0xf]  ;;  %v2644_v22 = vor.u32 %v3652_v17, %v2643_v16  ;;  %v2651_v28 = vld [vmem:[%s5037_s0 + $0x188] sm:$0xf]  ;;  %v3673_v54 = vld [vmem:[%s5037_s0 + $0x1c] sm:$0xf] }
  0x14   :  { %v2645_v19 = vld [vmem:[%s5037_s0 + $0x168] sm:$0xf0]  ;;  %v3654_v29 = vld [vmem:[%s5037_s0 + $0x1a4] sm:$0xf0]  ;;  %v2733_v55 = vld [vmem:[%s5037_s0 + $0x38] sm:$0xf0] }
  0x15   :  { %v2648_v23 = vor.u32 %v3651_v18, %v2645_v19  ;;  %v3653_v30 = vld [vmem:[%s5037_s0 + $0x18c] sm:$0xf]  ;;  %v2652_v34 = vor.u32 %v3654_v29, %v2651_v28  ;;  %v2659_v40 = vld [vmem:[%s5037_s0 + $0x1c8] sm:$0xf] }
  0x16   :  { %261 = vmatpush.bf16.msra.mxu0 %v3958_v10  ;;  %455 = vmatpush.bf16.msra.mxu2 %v3958_v10  ;;  %v2653_v31 = vld [vmem:[%s5037_s0 + $0x1a8] sm:$0xf0]  ;;  %v3656_v41 = vld [vmem:[%s5037_s0 + $0x1e4] sm:$0xf0] }
  0x17   :  { %310 = vmatpush.bf16.msra.mxu1 %v3963_v11  ;;  %504 = vmatpush.bf16.msra.mxu3 %v3963_v11  ;;  %v2656_v35 = vor.u32 %v3653_v30, %v2653_v31  ;;  %v3655_v42 = vld [vmem:[%s5037_s0 + $0x1cc] sm:$0xf]  ;;  %v2660_v46 = vor.u32 %v3656_v41, %v2659_v40 }
  0x18   :  { %v2661_v43 = vld [vmem:[%s5037_s0 + $0x1e8] sm:$0xf0] }
  0x19   :  { %v2664_v47 = vor.u32 %v3655_v42, %v2661_v43 }
  0x1a   :  { %262 = vmatpush.bf16.msra.mxu0 %v3972_v12  ;;  %456 = vmatpush.bf16.msra.mxu2 %v3972_v12 }
  0x1b   :  { %311 = vmatpush.bf16.msra.mxu1 %v3977_v13  ;;  %505 = vmatpush.bf16.msra.mxu3 %v3977_v13 }
  0x1e   :  { %263 = vmatpush.bf16.msra.mxu0 %v3984_v14  ;;  %457 = vmatpush.bf16.msra.mxu2 %v3984_v14 }
  0x1f   :  { %312 = vmatpush.bf16.msra.mxu1 %v3989_v15  ;;  %506 = vmatpush.bf16.msra.mxu3 %v3989_v15 }
  0x21   :  { %264 = vmatmul.bf16.vlgmr.msra.gmra.mxu0 %v2476_v24  ;;  %458 = vmatmul.bf16.vlgmr.msra.gmra.mxu2 %v2604_v26  ;;  %v2523_v24 = vld [vmem:[%s5037_s0 + $0x180] sm:$0xf]  ;;  %v3637_v26 = vld [vmem:[%s5037_s0 + $0x184] sm:$0xf] }
  0x22   :  { %870 = vmatpush.bf16.msrb.mxu2 %v3890_v0  ;;  %313 = vmatmul.bf16.vlgmr.msra.gmra.mxu1 %v2480_v25  ;;  %v3638_v25 = vld [vmem:[%s5037_s0 + $0x19c] sm:$0xf0] }
  0x23   :  { %919 = vmatpush.bf16.msrb.mxu3 %v3895_v1  ;;  %660 = vmatpush.bf16.msrb.mxu0 %v3890_v0  ;;  %v2507_v0 = vld [vmem:[%s5037_s0 + $0x100] sm:$0xf]  ;;  %v2524_v32 = vor.u32 %v3638_v25, %v2523_v24 }
  0x24   :  { %507 = vmatmul.bf16.vlgmr.msra.gmra.mxu3 %v2608_v27  ;;  %709 = vmatpush.bf16.msrb.mxu1 %v3895_v1  ;;  %v3634_v1 = vld [vmem:[%s5037_s0 + $0x11c] sm:$0xf0]  ;;  %v2525_v27 = vld [vmem:[%s5037_s0 + $0x1a0] sm:$0xf0] }
  0x25   :  { %v2528_v33 = vor.u32 %v3637_v26, %v2525_v27 }
  0x26   :  { %871 = vmatpush.bf16.msrb.mxu2 %v3902_v2 }
  0x27   :  { %920 = vmatpush.bf16.msrb.mxu3 %v3907_v3  ;;  %661 = vmatpush.bf16.msrb.mxu0 %v3902_v2  ;;  %v3633_v2 = vld [vmem:[%s5037_s0 + $0x104] sm:$0xf] }
  0x28   :  { %710 = vmatpush.bf16.msrb.mxu1 %v3907_v3  ;;  %v2509_v3 = vld [vmem:[%s5037_s0 + $0x120] sm:$0xf0] }
  0x2a   :  { %872 = vmatpush.bf16.msrb.mxu2 %v3916_v4 }
  0x2b   :  { %921 = vmatpush.bf16.msrb.mxu3 %v3921_v5  ;;  %662 = vmatpush.bf16.msrb.mxu0 %v3916_v4  ;;  %v2635_v4 = vld [vmem:[%s5037_s0 + $0x108] sm:$0xf] }
  0x2c   :  { %711 = vmatpush.bf16.msrb.mxu1 %v3921_v5  ;;  %v3650_v5 = vld [vmem:[%s5037_s0 + $0x124] sm:$0xf0] }
  0x2e   :  { %873 = vmatpush.bf16.msrb.mxu2 %v3930_v6 }
  0x2f   :  { %922 = vmatpush.bf16.msrb.mxu3 %v3935_v7  ;;  %663 = vmatpush.bf16.msrb.mxu0 %v3930_v6  ;;  %v3649_v6 = vld [vmem:[%s5037_s0 + $0x10c] sm:$0xf] }
  0x30   :  { %712 = vmatpush.bf16.msrb.mxu1 %v3935_v7  ;;  %v2637_v7 = vld [vmem:[%s5037_s0 + $0x128] sm:$0xf0] }
  0x31   :  { %269 = vmatmul.bf16.gmra.mxu0 %v2484_v36  ;;  %463 = vmatmul.bf16.gmra.mxu2 %v2612_v38  ;;  %v2531_v36 = vld [vmem:[%s5037_s0 + $0x1c0] sm:$0xf]  ;;  %v3639_v38 = vld [vmem:[%s5037_s0 + $0x1c4] sm:$0xf] }
  0x32   :  { %874 = vmatpush.bf16.msrb.mxu2 %v3944_v8  ;;  %318 = vmatmul.bf16.gmra.mxu1 %v2488_v37  ;;  %v3640_v37 = vld [vmem:[%s5037_s0 + $0x1dc] sm:$0xf0] }
  0x33   :  { %923 = vmatpush.bf16.msrb.mxu3 %v3949_v9  ;;  %664 = vmatpush.bf16.msrb.mxu0 %v3944_v8  ;;  %v2508_v8 = vor.u32 %v3634_v1, %v2507_v0  ;;  %v2532_v44 = vor.u32 %v3640_v37, %v2531_v36  ;;  %v2747_v36 = vld [vmem:[%s5037_s0 + $0x98] sm:$0xf] }
  0x34   :  { %512 = vmatmul.bf16.gmra.mxu3 %v2616_v39  ;;  %713 = vmatpush.bf16.msrb.mxu1 %v3949_v9  ;;  %v2512_v9 = vor.u32 %v3633_v2, %v2509_v3  ;;  %v2533_v39 = vld [vmem:[%s5037_s0 + $0x1e0] sm:$0xf0]  ;;  %v3678_v37 = vld [vmem:[%s5037_s0 + $0xb4] sm:$0xf0] }
  0x35   :  { %v2536_v45 = vor.u32 %v3639_v38, %v2533_v39  ;;  %v3677_v38 = vld [vmem:[%s5037_s0 + $0x9c] sm:$0xf] }
  0x36   :  { %875 = vmatpush.bf16.msrb.mxu2 %v3958_v10  ;;  %v2749_v39 = vld [vmem:[%s5037_s0 + $0xb8] sm:$0xf0] }
  0x37   :  { %924 = vmatpush.bf16.msrb.mxu3 %v3963_v11  ;;  %665 = vmatpush.bf16.msrb.mxu0 %v3958_v10  ;;  %v2636_v10 = vor.u32 %v3650_v5, %v2635_v4 }
  0x38   :  { %714 = vmatpush.bf16.msrb.mxu1 %v3963_v11  ;;  %v2640_v11 = vor.u32 %v3649_v6, %v2637_v7  ;;  %v2675_v6 = vld [vmem:[%s5037_s0 + $0x50] sm:$0xf] }
  0x39   :  { %v3660_v7 = vld [vmem:[%s5037_s0 + $0x6c] sm:$0xf0] }
  0x3a   :  { %876 = vmatpush.bf16.msrb.mxu2 %v3972_v12  ;;  %v2676_v16 = vor.u32 %v3660_v7, %v2675_v6 }
  0x3b   :  { %925 = vmatpush.bf16.msrb.mxu3 %v3977_v13  ;;  %666 = vmatpush.bf16.msrb.mxu0 %v3972_v12  ;;  %v2515_v12 = vld [vmem:[%s5037_s0 + $0x140] sm:$0xf] }
  0x3c   :  { %715 = vmatpush.bf16.msrb.mxu1 %v3977_v13  ;;  %v3636_v13 = vld [vmem:[%s5037_s0 + $0x15c] sm:$0xf0] }
  0x3d   :  { %v2516_v20 = vor.u32 %v3636_v13, %v2515_v12  ;;  %v3675_v12 = vld [vmem:[%s5037_s0 + $0x5c] sm:$0xf] }
  0x3e   :  { %877 = vmatpush.bf16.msrb.mxu2 %v3984_v14  ;;  %v2741_v13 = vld [vmem:[%s5037_s0 + $0x78] sm:$0xf0] }
  0x3f   :  { %926 = vmatpush.bf16.msrb.mxu3 %v3989_v15  ;;  %667 = vmatpush.bf16.msrb.mxu0 %v3984_v14  ;;  %v3635_v14 = vld [vmem:[%s5037_s0 + $0x144] sm:$0xf] }
  0x40   :  { %716 = vmatpush.bf16.msrb.mxu1 %v3989_v15  ;;  %v2517_v15 = vld [vmem:[%s5037_s0 + $0x160] sm:$0xf0] }
  0x41   :  { %274 = vmatmul.bf16.gmra.mxu0 %v2492_v48  ;;  %468 = vmatmul.bf16.gmra.mxu2 %v2620_v50  ;;  %v2520_v21 = vor.u32 %v3635_v14, %v2517_v15  ;;  %v2667_v48 = vld [vmem:[%s5037_s0 + $0x10] sm:$0xf]  ;;  %v3657_v50 = vld [vmem:[%s5037_s0 + $0x14] sm:$0xf] }
  0x42   :  { %323 = vmatmul.bf16.gmra.mxu1 %v2496_v49  ;;  %v3658_v49 = vld [vmem:[%s5037_s0 + $0x2c] sm:$0xf0] }
  0x43   :  { %v2668_v56 = vor.u32 %v3658_v49, %v2667_v48  ;;  %v2752_v48 = vor.u32 %v3677_v38, %v2749_v39  ;;  %v2763_v38 = vld [vmem:[%s5037_s0 + $0x118] sm:$0xf] }
  0x44   :  { %517 = vmatmul.bf16.gmra.mxu3 %v2624_v51  ;;  %v2669_v51 = vld [vmem:[%s5037_s0 + $0x30] sm:$0xf0]  ;;  %v3682_v39 = vld [vmem:[%s5037_s0 + $0x134] sm:$0xf0] }
  0x45   :  { %v2672_v57 = vor.u32 %v3657_v50, %v2669_v51 }
  0x51   :  { %279 = vmatmul.bf16.gmra.mxu0 %v2500_v60  ;;  %473 = vmatmul.bf16.gmra.mxu2 %v2628_v62  ;;  %v2732_v60 = vor.u32 %v3674_v53, %v2731_v52 }
  0x52   :  { %328 = vmatmul.bf16.gmra.mxu1 %v2504_v61  ;;  %v2736_v61 = vor.u32 %v3673_v54, %v2733_v55 }
  0x54   :  { %522 = vmatmul.bf16.gmra.mxu3 %v2632_v63 }
  0x61   :  { %284 = vmatmul.bf16.gmra.mxu0 %v2508_v8  ;;  %478 = vmatmul.bf16.gmra.mxu2 %v2636_v10  ;;  %v3659_v8 = vld [vmem:[%s5037_s0 + $0x54] sm:$0xf]  ;;  %v2739_v10 = vld [vmem:[%s5037_s0 + $0x58] sm:$0xf] }
  0x62   :  { %333 = vmatmul.bf16.gmra.mxu1 %v2512_v9  ;;  %v2677_v9 = vld [vmem:[%s5037_s0 + $0x70] sm:$0xf0] }
  0x63   :  { %v2680_v17 = vor.u32 %v3659_v8, %v2677_v9 }
  0x64   :  { %527 = vmatmul.bf16.gmra.mxu3 %v2640_v11  ;;  %v3676_v11 = vld [vmem:[%s5037_s0 + $0x74] sm:$0xf0] }
  0x71   :  { %289 = vmatmul.bf16.gmra.mxu0 %v2516_v20  ;;  %483 = vmatmul.bf16.gmra.mxu2 %v2644_v22  ;;  %v2744_v22 = vor.u32 %v3675_v12, %v2741_v13 }
  0x72   :  { %338 = vmatmul.bf16.gmra.mxu1 %v2520_v21  ;;  %v2740_v21 = vor.u32 %v3676_v11, %v2739_v10 }
  0x74   :  { %532 = vmatmul.bf16.gmra.mxu3 %v2648_v23 }
  0x81   :  { %294 = vmatmul.bf16.gmra.mxu0 %v2524_v32  ;;  %488 = vmatmul.bf16.gmra.mxu2 %v2652_v34  ;;  %v2683_v32 = vld [vmem:[%s5037_s0 + $0x90] sm:$0xf]  ;;  %v3661_v34 = vld [vmem:[%s5037_s0 + $0x94] sm:$0xf] }
  0x82   :  { %343 = vmatmul.bf16.gmra.mxu1 %v2528_v33  ;;  %v3662_v33 = vld [vmem:[%s5037_s0 + $0xac] sm:$0xf0] }
  0x83   :  { %v2684_v42 = vor.u32 %v3662_v33, %v2683_v32  ;;  %v3720_v32 = vld [vmem:[%s5039_s3 + $0xf8] sm:$0xff]  ;;  %v2699_v33 = vld [vmem:[%s5037_s0 + $0x110] sm:$0xf] }
  0x84   :  { %537 = vmatmul.bf16.gmra.mxu3 %v2656_v35  ;;  %v2685_v35 = vld [vmem:[%s5037_s0 + $0xb0] sm:$0xf0] }
  0x85   :  { %v2688_v43 = vor.u32 %v3661_v34, %v2685_v35  ;;  %v3666_v34 = vld [vmem:[%s5037_s0 + $0x12c] sm:$0xf0]  ;;  %v3696_v35 = vld [vmem:[%s5039_s3 + $0x38] sm:$0xff]  ;;  %1323 = vmatpush.bf16.msra.mxu3 %v3720_v32 }
  0x86   :  { %1164 = vmatpush.bf16.msra.mxu1 %v3696_v35 }
  0x91   :  { %299 = vmatmul.bf16.gmra.mxu0 %v2532_v44  ;;  %493 = vmatmul.bf16.gmra.mxu2 %v2660_v46 }
  0x92   :  { %348 = vmatmul.bf16.gmra.mxu1 %v2536_v45 }
  0x94   :  { %542 = vmatmul.bf16.gmra.mxu3 %v2664_v47  ;;  %v2748_v47 = vor.u32 %v3678_v37, %v2747_v36  ;;  %v3665_v36 = vld [vmem:[%s5037_s0 + $0x114] sm:$0xf] }
  0x95   :  { %v2701_v37 = vld [vmem:[%s5037_s0 + $0x130] sm:$0xf0] }
  0x9e   :  { %v265_v58 = vpop.f32.mrf.mxu0 }
  0x9f   :  { %v314_v59 = vpop.f32.mrf.mxu1 }
  0xa0   :  { %v4247_v62 = vadd.f32 %v314_v59, %v265_v58  ;;  %v2691_v58 = vld [vmem:[%s5037_s0 + $0xd0] sm:$0xf] }
  0xa1   :  { %668 = vmatmul.bf16.vlgmr.msrb.gmra.mxu0 %v2668_v56  ;;  %878 = vmatmul.bf16.vlgmr.msrb.gmra.mxu2 %v2732_v60  ;;  %v3664_v59 = vld [vmem:[%s5037_s0 + $0xec] sm:$0xf0]  ;;  %v3663_v60 = vld [vmem:[%s5037_s0 + $0xd4] sm:$0xf] }
  0xa2   :  { %717 = vmatmul.bf16.vlgmr.msrb.gmra.mxu1 %v2672_v57  ;;  %v2692_v8 = vor.u32 %v3664_v59, %v2691_v58 }
  0xa4   :  { %927 = vmatmul.bf16.vlgmr.msrb.gmra.mxu3 %v2736_v61  ;;  %v459_v63 = vpop.f32.mrf.mxu2  ;;  %v2693_v61 = vld [vmem:[%s5037_s0 + $0xf0] sm:$0xf0] }
  0xa5   :  { %v2696_v9 = vor.u32 %v3663_v60, %v2693_v61 }
  0xa6   :  { %v267_v2 = vpop.f32.mrf.mxu0 }
  0xa7   :  { %v508_v0 = vpop.f32.mrf.mxu3  ;;  %v316_v3 = vpop.f32.mrf.mxu1 }
  0xa8   :  { %v4249_v1 = vadd.f32 %v508_v0, %v459_v63  ;;  %v4251_v4 = vadd.f32 %v316_v3, %v267_v2  ;;  %v2755_v63 = vld [vmem:[%s5037_s0 + $0xd8] sm:$0xf]  ;;  %v3679_v2 = vld [vmem:[%s5037_s0 + $0xdc] sm:$0xf] }
  0xa9   :  { %v3680_v0 = vld [vmem:[%s5037_s0 + $0xf4] sm:$0xf0]  ;;  %v2757_v3 = vld [vmem:[%s5037_s0 + $0xf8] sm:$0xf0] }
  0xaa   :  { %v548_v5 = vmax.f32 %v4247_v62, %v4249_v1  ;;  %v2756_v13 = vor.u32 %v3680_v0, %v2755_v63  ;;  %v3732_v62 = vld [vmem:[%s5039_s3 + $0x158] sm:$0xff]  ;;  %v3742_v1 = vld [vmem:[%s5039_s3 + $0x1a8] sm:$0xff] }
  0xac   :  { %v461_v14 = vpop.f32.mrf.mxu2 }
  0xae   :  { %v270_v19 = vpop.f32.mrf.mxu0 }
  0xaf   :  { %v510_v15 = vpop.f32.mrf.mxu3  ;;  %v319_v20 = vpop.f32.mrf.mxu1 }
  0xb0   :  { %v4279_v18 = vadd.f32 %v510_v15, %v461_v14  ;;  %v4281_v23 = vadd.f32 %v319_v20, %v270_v19  ;;  %v2760_v14 = vor.u32 %v3679_v2, %v2757_v3  ;;  %v3711_v3 = vld [vmem:[%s5039_s3 + $0xb0] sm:$0xff] }
  0xb1   :  { %673 = vmatmul.bf16.gmra.mxu0 %v2676_v16  ;;  %883 = vmatmul.bf16.gmra.mxu2 %v2740_v21 }
  0xb2   :  { %v549_v24 = vmax.f32 %v4251_v4, %v4279_v18  ;;  %722 = vmatmul.bf16.gmra.mxu1 %v2680_v17  ;;  %v3750_v4 = vld [vmem:[%s5039_s3 + $0x1e8] sm:$0xff] }
  0xb4   :  { %932 = vmatmul.bf16.gmra.mxu3 %v2744_v22  ;;  %v464_v25 = vpop.f32.mrf.mxu2 }
  0xb6   :  { %v272_v28 = vpop.f32.mrf.mxu0 }
  0xb7   :  { %v513_v26 = vpop.f32.mrf.mxu3  ;;  %v321_v29 = vpop.f32.mrf.mxu1 }
  0xb8   :  { %v4285_v27 = vadd.f32 %v513_v26, %v464_v25  ;;  %v4287_v30 = vadd.f32 %v321_v29, %v272_v28  ;;  %v3712_v28 = vld [vmem:[%s5039_s3 + $0xb8] sm:$0xff] }
  0xb9   :  { %v3704_v29 = vld [vmem:[%s5039_s3 + $0x78] sm:$0xff]  ;;  %1243 = vmatpush.bf16.msra.mxu2 %v3712_v28 }
  0xba   :  { %v550_v31 = vmax.f32 %v4281_v23, %v4285_v27  ;;  %1103 = vmatpush.bf16.msra.mxu0 %v3704_v29  ;;  %v3768_v23 = vld [vmem:[%s5039_s3 + $0x278] sm:$0xff]  ;;  %v3759_v27 = vld [vmem:[%s5039_s3 + $0x230] sm:$0xff] }
  0xbc   :  { %v466_v40 = vpop.f32.mrf.mxu2 }
  0xbd   :  { %1244 = vmatpush.bf16.msra.mxu2 %v3711_v3  ;;  %v2779_v3 = vld [vmem:[%s5037_s0 + $0x198] sm:$0xf] }
  0xbe   :  { %v275_v45 = vpop.f32.mrf.mxu0 }
  0xbf   :  { %v515_v41 = vpop.f32.mrf.mxu3  ;;  %v324_v46 = vpop.f32.mrf.mxu1 }
  0xc0   :  { %v4315_v44 = vadd.f32 %v515_v41, %v466_v40  ;;  %v4317_v49 = vadd.f32 %v324_v46, %v275_v45  ;;  %v3681_v40 = vld [vmem:[%s5037_s0 + $0x11c] sm:$0xf]  ;;  %v2700_v45 = vor.u32 %v3666_v34, %v2699_v33  ;;  %v2704_v46 = vor.u32 %v3665_v36, %v2701_v37 }
  0xc1   :  { %678 = vmatmul.bf16.gmra.mxu0 %v2684_v42  ;;  %888 = vmatmul.bf16.gmra.mxu2 %v2748_v47  ;;  %v2765_v41 = vld [vmem:[%s5037_s0 + $0x138] sm:$0xf0] }
  0xc2   :  { %v551_v50 = vmax.f32 %v4287_v30, %v4315_v44  ;;  %727 = vmatmul.bf16.gmra.mxu1 %v2688_v43  ;;  %v3776_v30 = vld [vmem:[%s5039_s3 + $0x2b8] sm:$0xff]  ;;  %v3757_v44 = vld [vmem:[%s5039_s3 + $0x220] sm:$0xff] }
  0xc4   :  { %937 = vmatmul.bf16.gmra.mxu3 %v2752_v48  ;;  %v469_v51 = vpop.f32.mrf.mxu2 }
  0xc6   :  { %v277_v54 = vpop.f32.mrf.mxu0 }
  0xc7   :  { %v518_v52 = vpop.f32.mrf.mxu3  ;;  %v326_v55 = vpop.f32.mrf.mxu1 }
  0xc8   :  { %v4321_v53 = vadd.f32 %v518_v52, %v469_v51  ;;  %v4323_v56 = vadd.f32 %v326_v55, %v277_v54  ;;  %v2764_v52 = vor.u32 %v3682_v39, %v2763_v38  ;;  %v2768_v54 = vor.u32 %v3681_v40, %v2765_v41 }
  0xca   :  { %v552_v57 = vmax.f32 %v4317_v49, %v4321_v53  ;;  %v3784_v49 = vld [vmem:[%s5039_s3 + $0x2f8] sm:$0xff]  ;;  %v3755_v53 = vld [vmem:[%s5039_s3 + $0x210] sm:$0xff] }
  0xcc   :  { %v471_v6 = vpop.f32.mrf.mxu2 }
  0xce   :  { %v280_v11 = vpop.f32.mrf.mxu0 }
  0xcf   :  { %v520_v7 = vpop.f32.mrf.mxu3  ;;  %v329_v12 = vpop.f32.mrf.mxu1 }
  0xd0   :  { %v4351_v10 = vadd.f32 %v520_v7, %v471_v6  ;;  %v4353_v15 = vadd.f32 %v329_v12, %v280_v11  ;;  %v3703_v6 = vld [vmem:[%s5039_s3 + $0x70] sm:$0xff] }
  0xd1   :  { %683 = vmatmul.bf16.gmra.mxu0 %v2692_v8  ;;  %893 = vmatmul.bf16.gmra.mxu2 %v2756_v13  ;;  %v3719_v7 = vld [vmem:[%s5039_s3 + $0xf0] sm:$0xff] }
  0xd2   :  { %v553_v16 = vmax.f32 %v4323_v56, %v4351_v10  ;;  %732 = vmatmul.bf16.gmra.mxu1 %v2696_v9  ;;  %v2707_v8 = vld [vmem:[%s5037_s0 + $0x150] sm:$0xf]  ;;  %v3667_v12 = vld [vmem:[%s5037_s0 + $0x154] sm:$0xf]  ;;  %1104 = vmatpush.bf16.msra.mxu0 %v3703_v6  ;;  %v3686_v6 = vld [vmem:[%s5037_s0 + $0x1b4] sm:$0xf0] }
  0xd3   :  { %v3668_v9 = vld [vmem:[%s5037_s0 + $0x16c] sm:$0xf0]  ;;  %v2709_v13 = vld [vmem:[%s5037_s0 + $0x170] sm:$0xf0]  ;;  %1324 = vmatpush.bf16.msra.mxu3 %v3719_v7  ;;  %v3685_v7 = vld [vmem:[%s5037_s0 + $0x19c] sm:$0xf] }
  0xd4   :  { %942 = vmatmul.bf16.gmra.mxu3 %v2760_v14  ;;  %v474_v17 = vpop.f32.mrf.mxu2  ;;  %v3695_v11 = vld [vmem:[%s5039_s3 + $0x30] sm:$0xff]  ;;  %v2771_v14 = vld [vmem:[%s5037_s0 + $0x158] sm:$0xf]  ;;  %v2708_v29 = vor.u32 %v3668_v9, %v2707_v8  ;;  %v2712_v32 = vor.u32 %v3667_v12, %v2709_v13  ;;  %v2781_v8 = vld [vmem:[%s5037_s0 + $0x1b8] sm:$0xf0] }
  0xd5   :  { %1165 = vmatpush.bf16.msra.mxu1 %v3695_v11  ;;  %v3693_v9 = vld [vmem:[%s5039_s3 + $0x20] sm:$0xff] }
  0xd6   :  { %v282_v21 = vpop.f32.mrf.mxu0  ;;  %v3753_v10 = vld [vmem:[%s5039_s3 + $0x200] sm:$0xff] }
  0xd7   :  { %v523_v19 = vpop.f32.mrf.mxu3  ;;  %v331_v22 = vpop.f32.mrf.mxu1 }
  0xd8   :  { %v4357_v20 = vadd.f32 %v523_v19, %v474_v17  ;;  %v4359_v25 = vadd.f32 %v331_v22, %v282_v21  ;;  %v3684_v17 = vld [vmem:[%s5037_s0 + $0x174] sm:$0xf0]  ;;  %v3683_v19 = vld [vmem:[%s5037_s0 + $0x15c] sm:$0xf] }
  0xd9   :  { %v2773_v21 = vld [vmem:[%s5037_s0 + $0x178] sm:$0xf0]  ;;  %v2772_v35 = vor.u32 %v3684_v17, %v2771_v14 }
  0xda   :  { %v554_v26 = vmax.f32 %v4353_v15, %v4357_v20  ;;  %v2776_v36 = vor.u32 %v3683_v19, %v2773_v21  ;;  %v2780_v21 = vor.u32 %v3686_v6, %v2779_v3  ;;  %v3671_v3 = vld [vmem:[%s5037_s0 + $0x1d4] sm:$0xf]  ;;  %v3780_v15 = vld [vmem:[%s5039_s3 + $0x2d8] sm:$0xff] }
  0xdb   :  { %v2725_v6 = vld [vmem:[%s5037_s0 + $0x1f0] sm:$0xf0] }
  0xdc   :  { %v476_v42 = vpop.f32.mrf.mxu2 }
  0xde   :  { %v285_v48 = vpop.f32.mrf.mxu0 }
  0xdf   :  { %v525_v43 = vpop.f32.mrf.mxu3  ;;  %v334_v51 = vpop.f32.mrf.mxu1 }
  0xe0   :  { %v4399_v47 = vadd.f32 %v525_v43, %v476_v42  ;;  %v4401_v55 = vadd.f32 %v334_v51, %v285_v48  ;;  %v3694_v43 = vld [vmem:[%s5039_s3 + $0x28] sm:$0xff] }
  0xe1   :  { %688 = vmatmul.bf16.gmra.mxu0 %v2700_v45  ;;  %898 = vmatmul.bf16.gmra.mxu2 %v2764_v52  ;;  %v3702_v48 = vld [vmem:[%s5039_s3 + $0x68] sm:$0xff]  ;;  %v2715_v52 = vld [vmem:[%s5037_s0 + $0x190] sm:$0xf] }
  0xe2   :  { %v555_v58 = vmax.f32 %v4359_v25, %v4399_v47  ;;  %737 = vmatmul.bf16.gmra.mxu1 %v2704_v46  ;;  %v3710_v46 = vld [vmem:[%s5039_s3 + $0xa8] sm:$0xff]  ;;  %1105 = vmatpush.bf16.msra.mxu0 %v3702_v48 }
  0xe3   :  { %v3718_v51 = vld [vmem:[%s5039_s3 + $0xe8] sm:$0xff]  ;;  %1166 = vmatpush.bf16.msra.mxu1 %v3694_v43  ;;  %1245 = vmatpush.bf16.msra.mxu2 %v3710_v46 }
  0xe4   :  { %947 = vmatmul.bf16.gmra.mxu3 %v2768_v54  ;;  %v479_v59 = vpop.f32.mrf.mxu2  ;;  %v3670_v54 = vld [vmem:[%s5037_s0 + $0x1ac] sm:$0xf0]  ;;  %v3798_v25 = vld [vmem:[%s5039_s3 + $0x368] sm:$0xff] }
  0xe5   :  { %1325 = vmatpush.bf16.msra.mxu3 %v3718_v51  ;;  %v2716_v13 = vor.u32 %v3670_v54, %v2715_v52  ;;  %v3699_v51 = vld [vmem:[%s5039_s3 + $0x50] sm:$0xff]  ;;  %v3690_v52 = vld [vmem:[%s5039_s3 + $0x8] sm:$0xff] }
  0xe6   :  { %v4407_v63 = vpop.f32.mrf.mxu0 }
  0xe7   :  { %v528_v60 = vpop.f32.mrf.mxu3  ;;  %v4409_v0 = vpop.f32.mrf.mxu1  ;;  %1167 = vmatpush.bf16.msra.mxu1 %v3693_v9  ;;  %v3687_v9 = vld [vmem:[%s5037_s0 + $0x1dc] sm:$0xf] }
  0xe8   :  { %v4405_v61 = vadd.f32 %v528_v60, %v479_v59  ;;  %v3669_v59 = vld [vmem:[%s5037_s0 + $0x194] sm:$0xf] }
  0xe9   :  { %v2717_v60 = vld [vmem:[%s5037_s0 + $0x1b0] sm:$0xf0] }
  0xea   :  { %v556_v2 = vmax.f32 %v4401_v55, %v4405_v61  ;;  %v2720_v14 = vor.u32 %v3669_v59, %v2717_v60  ;;  %v2723_v59 = vld [vmem:[%s5037_s0 + $0x1d0] sm:$0xf]  ;;  %v3806_v55 = vld [vmem:[%s5039_s3 + $0x3a8] sm:$0xff] }
  0xeb   :  { %v3672_v60 = vld [vmem:[%s5037_s0 + $0x1ec] sm:$0xf0] }
  0xec   :  { %v4449_v22 = vpop.f32.mrf.mxu2 }
  0xee   :  { %v290_v33 = vpop.f32.mrf.mxu0 }
  0xef   :  { %v4451_v28 = vpop.f32.mrf.mxu3  ;;  %v339_v34 = vpop.f32.mrf.mxu1 }
  0xf0   :  { %v4453_v37 = vadd.f32 %v339_v34, %v290_v33  ;;  %v3692_v34 = vld [vmem:[%s5039_s3 + $0x18] sm:$0xff]  ;;  %v531_v61 = vadd.f32 %v4451_v28, %v4449_v22  ;;  %v3795_v22 = vld [vmem:[%s5039_s3 + $0x350] sm:$0xff]  ;;  %v3805_v28 = vld [vmem:[%s5039_s3 + $0x3a0] sm:$0xff] }
  0xf1   :  { %693 = vmatmul.bf16.gmra.mxu0 %v2708_v29  ;;  %903 = vmatmul.bf16.gmra.mxu2 %v2772_v35  ;;  %v2784_v29 = vor.u32 %v3685_v7, %v2781_v8  ;;  %v3700_v35 = vld [vmem:[%s5039_s3 + $0x58] sm:$0xff] }
  0xf2   :  { %742 = vmatmul.bf16.gmra.mxu1 %v2712_v32  ;;  %v3701_v32 = vld [vmem:[%s5039_s3 + $0x60] sm:$0xff]  ;;  %v2787_v7 = vld [vmem:[%s5037_s0 + $0x1d8] sm:$0xf] }
  0xf3   :  { %1106 = vmatpush.bf16.msra.mxu0 %v3701_v32  ;;  %1168 = vmatpush.bf16.msra.mxu1 %v3692_v34  ;;  %v3688_v8 = vld [vmem:[%s5037_s0 + $0x1f4] sm:$0xf0]  ;;  %v2724_v32 = vor.u32 %v3672_v60, %v2723_v59  ;;  %v2728_v34 = vor.u32 %v3671_v3, %v2725_v6  ;;  %v3707_v3 = vld [vmem:[%s5039_s3 + $0x90] sm:$0xff] }
  0xf4   :  { %952 = vmatmul.bf16.gmra.mxu3 %v2776_v36  ;;  %v484_v38 = vpop.f32.mrf.mxu2  ;;  %v3691_v36 = vld [vmem:[%s5039_s3 + $0x10] sm:$0xff]  ;;  %v3708_v59 = vld [vmem:[%s5039_s3 + $0x98] sm:$0xff] }
  0xf5   :  { %v3728_v60 = vld [vmem:[%s5039_s3 + $0x138] sm:$0xff]  ;;  %v3727_v6 = vld [vmem:[%s5039_s3 + $0x130] sm:$0xff] }
  0xf6   :  { %v4457_v41 = vpop.f32.mrf.mxu0 }
  0xf7   :  { %v533_v39 = vpop.f32.mrf.mxu3  ;;  %v4459_v42 = vpop.f32.mrf.mxu1  ;;  %1107 = vmatpush.bf16.msra.mxu0 %v3700_v35  ;;  %1169 = vmatpush.bf16.msra.mxu1 %v3691_v36 }
  0xf8   :  { %v4455_v40 = vadd.f32 %v533_v39, %v484_v38 }
  0xfa   :  { %v558_v45 = vmax.f32 %v4453_v37, %v4455_v40  ;;  %v342_v37 = vadd.f32 %v4459_v42, %v4457_v41 }
  0xfb   :  { %1108 = vmatpush.bf16.msra.mxu0 %v3699_v51  ;;  %1170 = vmatpush.bf16.msra.mxu1 %v3690_v52  ;;  %v3717_v51 = vld [vmem:[%s5039_s3 + $0xe0] sm:$0xff] }
  0xfc   :  { %v4502_v11 = vpop.f32.mrf.mxu2  ;;  %v3697_v52 = vld [vmem:[%s5039_s3 + $0x40] sm:$0xff]  ;;  %1326 = vmatpush.bf16.msra.mxu3 %v3717_v51 }
  0xfd   :  { %v3725_v51 = vld [vmem:[%s5039_s3 + $0x120] sm:$0xff] }
  0xfe   :  { %v295_v17 = vpop.f32.mrf.mxu0 }
  0xff   :  { %v4504_v12 = vpop.f32.mrf.mxu3  ;;  %v344_v19 = vpop.f32.mrf.mxu1 }
 0x100   :  { %v4509_v33 = vadd.f32 %v344_v19, %v295_v17  ;;  %v3709_v17 = vld [vmem:[%s5039_s3 + $0xa0] sm:$0xff] }
 0x101   :  { %698 = vmatmul.bf16.gmra.mxu0 %v2716_v13  ;;  %908 = vmatmul.bf16.gmra.mxu2 %v2780_v21  ;;  %v3698_v13 = vld [vmem:[%s5039_s3 + $0x48] sm:$0xff]  ;;  %v3689_v19 = vld [vmem:[%s5039_s3] sm:$0xff] }
 0x102   :  { %747 = vmatmul.bf16.gmra.mxu1 %v2720_v14  ;;  %v2789_v14 = vld [vmem:[%s5037_s0 + $0x1f8] sm:$0xf0]  ;;  %1109 = vmatpush.bf16.msra.mxu0 %v3698_v13 }
 0x103   :  { %1246 = vmatpush.bf16.msra.mxu2 %v3709_v17  ;;  %1171 = vmatpush.bf16.msra.mxu1 %v3689_v19  ;;  %v3716_v19 = vld [vmem:[%s5039_s3 + $0xd8] sm:$0xff] }
 0x104   :  { %957 = vmatmul.bf16.gmra.mxu3 %v2784_v29  ;;  %v489_v38 = vpop.f32.mrf.mxu2 }
 0x105   :  { %1327 = vmatpush.bf16.msra.mxu3 %v3716_v19  ;;  %v3734_v19 = vld [vmem:[%s5039_s3 + $0x168] sm:$0xff] }
 0x106   :  { %v4522_v46 = vpop.f32.mrf.mxu0  ;;  %1110 = vmatpush.bf16.msra.mxu0 %v3697_v52  ;;  %v3735_v52 = vld [vmem:[%s5039_s3 + $0x170] sm:$0xff] }
 0x107   :  { %v538_v39 = vpop.f32.mrf.mxu3  ;;  %v4524_v48 = vpop.f32.mrf.mxu1  ;;  %1247 = vmatpush.bf16.msra.mxu2 %v3708_v59 }
 0x108   :  { %v4520_v43 = vadd.f32 %v538_v39, %v489_v38  ;;  %v2788_v38 = vor.u32 %v3688_v8, %v2787_v7  ;;  %v2792_v39 = vor.u32 %v3687_v9, %v2789_v14 }
 0x10a   :  { %v560_v54 = vmax.f32 %v4509_v33, %v4520_v43  ;;  %1403 = vmatpush.bf16.msrb.mxu0 %v3728_v60 }
 0x10b   :  { %1248 = vmatpush.bf16.msra.mxu2 %v3707_v3 }
 0x10c   :  { %v4567_v21 = vpop.f32.mrf.mxu2 }
 0x10e   :  { %v300_v35 = vpop.f32.mrf.mxu0  ;;  %1404 = vmatpush.bf16.msrb.mxu0 %v3727_v6 }
 0x10f   :  { %v4569_v29 = vpop.f32.mrf.mxu3  ;;  %v349_v36 = vpop.f32.mrf.mxu1 }
 0x110   :  { %v4577_v13 = vadd.f32 %v349_v36, %v300_v35  ;;  %v3736_v36 = vld [vmem:[%s5039_s3 + $0x178] sm:$0xff]  ;;  %v3722_v35 = vld [vmem:[%s5039_s3 + $0x108] sm:$0xff] }
 0x111   :  { %703 = vmatmul.bf16.gmra.mxu0 %v2724_v32  ;;  %913 = vmatmul.bf16.gmra.mxu2 %v2788_v38  ;;  %v3706_v32 = vld [vmem:[%s5039_s3 + $0x88] sm:$0xff]  ;;  %v3705_v38 = vld [vmem:[%s5039_s3 + $0x80] sm:$0xff] }
 0x112   :  { %752 = vmatmul.bf16.gmra.mxu1 %v2728_v34  ;;  %v3726_v34 = vld [vmem:[%s5039_s3 + $0x128] sm:$0xff]  ;;  %1249 = vmatpush.bf16.msra.mxu2 %v3706_v32  ;;  %v3744_v32 = vld [vmem:[%s5039_s3 + $0x1b8] sm:$0xff] }
 0x113   :  { %1483 = vmatpush.bf16.msrb.mxu1 %v3736_v36  ;;  %1405 = vmatpush.bf16.msrb.mxu0 %v3726_v34  ;;  %v3713_v36 = vld [vmem:[%s5039_s3 + $0xc0] sm:$0xff] }
 0x114   :  { %962 = vmatmul.bf16.gmra.mxu3 %v2792_v39  ;;  %v494_v7 = vpop.f32.mrf.mxu2  ;;  %v3715_v39 = vld [vmem:[%s5039_s3 + $0xd0] sm:$0xff] }
 0x115   :  { %1328 = vmatpush.bf16.msra.mxu3 %v3715_v39  ;;  %v3733_v39 = vld [vmem:[%s5039_s3 + $0x160] sm:$0xff] }
 0x116   :  { %v4593_v14 = vpop.f32.mrf.mxu0  ;;  %1250 = vmatpush.bf16.msra.mxu2 %v3705_v38  ;;  %v3723_v38 = vld [vmem:[%s5039_s3 + $0x110] sm:$0xff] }
 0x117   :  { %v543_v8 = vpop.f32.mrf.mxu3  ;;  %v4595_v17 = vpop.f32.mrf.mxu1  ;;  %1484 = vmatpush.bf16.msrb.mxu1 %v3735_v52  ;;  %1406 = vmatpush.bf16.msrb.mxu0 %v3725_v51  ;;  %v3743_v51 = vld [vmem:[%s5039_s3 + $0x1b0] sm:$0xff] }
 0x118   :  { %v4591_v9 = vadd.f32 %v543_v8, %v494_v7  ;;  %v3714_v7 = vld [vmem:[%s5039_s3 + $0xc8] sm:$0xff]  ;;  %v3724_v8 = vld [vmem:[%s5039_s3 + $0x118] sm:$0xff] }
 0x119   :  { %1329 = vmatpush.bf16.msra.mxu3 %v3714_v7 }
 0x11a   :  { %1563 = vmatpush.bf16.msrb.mxu2 %v3744_v32 }
 0x11b   :  { %1485 = vmatpush.bf16.msrb.mxu1 %v3734_v19  ;;  %1407 = vmatpush.bf16.msrb.mxu0 %v3724_v8  ;;  %v4657_v8 = vld [vmem:[%s5038_s2] ss:$0 sm:$0xff] }
 0x11c   :  { %v4623_v59 = vpop.f32.mrf.mxu2 }
 0x11d   :  { %1330 = vmatpush.bf16.msra.mxu3 %v3713_v36 }
 0x11e   :  { %v669_v3 = vpop.f32.mrf.mxu0  ;;  %1564 = vmatpush.bf16.msrb.mxu2 %v3743_v51  ;;  %v3731_v51 = vld [vmem:[%s5039_s3 + $0x150] sm:$0xff] }
 0x11f   :  { %v4625_v60 = vpop.f32.mrf.mxu3  ;;  %v718_v6 = vpop.f32.mrf.mxu1  ;;  %1486 = vmatpush.bf16.msrb.mxu1 %v3733_v39  ;;  %1408 = vmatpush.bf16.msrb.mxu0 %v3723_v38  ;;  %v3721_v39 = vld [vmem:[%s5039_s3 + $0x100] sm:$0xff] }
 0x120   :  { %v719_v34 = vadd.f32 %v718_v6, %v669_v3 }
 0x122   :  { %v758_v6 = vmax.f32 %v548_v5, %v719_v34  ;;  %v3752_v34 = vld [vmem:[%s5039_s3 + $0x1f8] sm:$0xff]  ;;  %1565 = vmatpush.bf16.msrb.mxu2 %v3742_v1 }
 0x123   :  { %1487 = vmatpush.bf16.msrb.mxu1 %v3732_v62  ;;  %1409 = vmatpush.bf16.msrb.mxu0 %v3722_v35 }
 0x124   :  { %v879_v52 = vpop.f32.mrf.mxu2  ;;  %1643 = vmatpush.bf16.msrb.mxu3 %v3752_v34  ;;  %v3730_v34 = vld [vmem:[%s5039_s3 + $0x148] sm:$0xff] }
 0x126   :  { %v671_v19 = vpop.f32.mrf.mxu0 }
 0x127   :  { %v928_v3 = vpop.f32.mrf.mxu3  ;;  %v720_v32 = vpop.f32.mrf.mxu1  ;;  %1488 = vmatpush.bf16.msrb.mxu1 %v3731_v51  ;;  %1410 = vmatpush.bf16.msrb.mxu0 %v3721_v39  ;;  %v3729_v39 = vld [vmem:[%s5039_s3 + $0x140] sm:$0xff]  ;;  %v3739_v51 = vld [vmem:[%s5039_s3 + $0x190] sm:$0xff] }
 0x128   :  { %v929_v7 = vadd.f32 %v928_v3, %v879_v52  ;;  %v721_v38 = vadd.f32 %v720_v32, %v671_v19  ;;  %v3741_v52 = vld [vmem:[%s5039_s3 + $0x1a0] sm:$0xff] }
 0x129   :  { %1566 = vmatpush.bf16.msrb.mxu2 %v3741_v52  ;;  %v3749_v52 = vld [vmem:[%s5039_s3 + $0x1e0] sm:$0xff] }
 0x12a   :  { %v968_v5 = vmax.f32 %v758_v6, %v929_v7  ;;  %v3751_v6 = vld [vmem:[%s5039_s3 + $0x1f0] sm:$0xff]  ;;  %v759_v32 = vmax.f32 %v549_v24, %v721_v38 }
 0x12b   :  { %1644 = vmatpush.bf16.msrb.mxu3 %v3751_v6  ;;  %1489 = vmatpush.bf16.msrb.mxu1 %v3730_v34  ;;  %v3738_v34 = vld [vmem:[%s5039_s3 + $0x188] sm:$0xff] }
 0x12c   :  { %v988_v36 = vadd.f32 %v4657_v8, %v968_v5  ;;  %v881_v7 = vpop.f32.mrf.mxu2 }
 0x12e   :  { %v1004_v3 = vmax.f32 %v988_v36, 0.0  ;;  %v674_v1 = vpop.f32.mrf.mxu0  ;;  %v3740_v36 = vld [vmem:[%s5039_s3 + $0x198] sm:$0xff] }
 0x12f   :  { %v930_v35 = vpop.f32.mrf.mxu3  ;;  %v723_v5 = vpop.f32.mrf.mxu1  ;;  %1567 = vmatpush.bf16.msrb.mxu2 %v3740_v36  ;;  %1645 = vmatpush.bf16.msrb.mxu3 %v3750_v4  ;;  %v3748_v36 = vld [vmem:[%s5039_s3 + $0x1d8] sm:$0xff] }
 0x130   :  { %v1020_v19 = vpack.c.bf16 %v1004_v3, %v1004_v3  ;;  %v931_v62 = vadd.f32 %v930_v35, %v881_v7  ;;  %v724_v38 = vadd.f32 %v723_v5, %v674_v1  ;;  %v3760_v35 = vld [vmem:[%s5039_s3 + $0x238] sm:$0xff]  ;;  %1490 = vmatpush.bf16.msrb.mxu1 %v3729_v39 }
 0x132   :  { %v969_v18 = vmax.f32 %v759_v32, %v931_v62  ;;  %1172 = vmatmul.bf16.vlgmr.msra.gmra.mxu1 %v1020_v19  ;;  %v760_v32 = vmax.f32 %v550_v31, %v724_v38  ;;  %v3747_v38 = vld [vmem:[%s5039_s3 + $0x1d0] sm:$0xff] }
 0x133   :  { %1568 = vmatpush.bf16.msrb.mxu2 %v3739_v51  ;;  %1646 = vmatpush.bf16.msrb.mxu3 %v3749_v52  ;;  %v3767_v51 = vld [vmem:[%s5039_s3 + $0x270] sm:$0xff] }
 0x134   :  { %v989_v24 = vadd.f32 %v4657_v8, %v969_v18  ;;  %v884_v6 = vpop.f32.mrf.mxu2  ;;  %1803 = vmatpush.bf16.msra.mxu1 %v3768_v23  ;;  %v3765_v23 = vld [vmem:[%s5039_s3 + $0x260] sm:$0xff] }
 0x136   :  { %v1005_v3 = vmax.f32 %v989_v24, 0.0  ;;  %v676_v1 = vpop.f32.mrf.mxu0  ;;  %v3737_v24 = vld [vmem:[%s5039_s3 + $0x180] sm:$0xff] }
 0x137   :  { %v933_v7 = vpop.f32.mrf.mxu3  ;;  %v725_v5 = vpop.f32.mrf.mxu1  ;;  %1569 = vmatpush.bf16.msrb.mxu2 %v3738_v34  ;;  %1647 = vmatpush.bf16.msrb.mxu3 %v3748_v36 }
 0x138   :  { %v1037_v19 = vpack.c.bf16 %v1005_v3, %v1005_v3  ;;  %v934_v62 = vadd.f32 %v933_v7, %v884_v6  ;;  %v726_v18 = vadd.f32 %v725_v5, %v676_v1  ;;  %v3758_v6 = vld [vmem:[%s5039_s3 + $0x228] sm:$0xff]  ;;  %1804 = vmatpush.bf16.msra.mxu1 %v3767_v51 }
 0x139   :  { %v3746_v1 = vld [vmem:[%s5039_s3 + $0x1c8] sm:$0xff] }
 0x13a   :  { %v970_v4 = vmax.f32 %v760_v32, %v934_v62  ;;  %1111 = vmatmul.bf16.vlgmr.msra.gmra.mxu0 %v1037_v19  ;;  %v3766_v5 = vld [vmem:[%s5039_s3 + $0x268] sm:$0xff] }
 0x13b   :  { %1723 = vmatpush.bf16.msra.mxu0 %v3760_v35  ;;  %v761_v35 = vmax.f32 %v551_v50, %v726_v18  ;;  %1570 = vmatpush.bf16.msrb.mxu2 %v3737_v24 }
 0x13c   :  { %v990_v31 = vadd.f32 %v4657_v8, %v970_v4  ;;  %v886_v52 = vpop.f32.mrf.mxu2  ;;  %1648 = vmatpush.bf16.msrb.mxu3 %v3747_v38  ;;  %1805 = vmatpush.bf16.msra.mxu1 %v3766_v5  ;;  %v3745_v4 = vld [vmem:[%s5039_s3 + $0x1c0] sm:$0xff]  ;;  %v3756_v38 = vld [vmem:[%s5039_s3 + $0x218] sm:$0xff] }
 0x13e   :  { %v1006_v39 = vmax.f32 %v990_v31, 0.0  ;;  %v679_v32 = vpop.f32.mrf.mxu0  ;;  %v3775_v31 = vld [vmem:[%s5039_s3 + $0x2b0] sm:$0xff] }
 0x13f   :  { %v935_v3 = vpop.f32.mrf.mxu3  ;;  %1724 = vmatpush.bf16.msra.mxu0 %v3759_v27  ;;  %v728_v62 = vpop.f32.mrf.mxu1 }
 0x140   :  { %v1177_v7 = vpack.c.bf16 %v1006_v39, %v1006_v39  ;;  %v936_v19 = vadd.f32 %v935_v3, %v886_v52  ;;  %v729_v36 = vadd.f32 %v728_v62, %v679_v32  ;;  %1649 = vmatpush.bf16.msrb.mxu3 %v3746_v1  ;;  %1806 = vmatpush.bf16.msra.mxu1 %v3765_v23  ;;  %v3763_v62 = vld [vmem:[%s5039_s3 + $0x250] sm:$0xff]  ;;  %v3773_v1 = vld [vmem:[%s5039_s3 + $0x2a0] sm:$0xff] }
 0x142   :  { %v971_v34 = vmax.f32 %v761_v35, %v936_v19  ;;  %1251 = vmatmul.bf16.vlgmr.msra.gmra.mxu2 %v1177_v7  ;;  %v762_v51 = vmax.f32 %v552_v57, %v729_v36  ;;  %v3764_v7 = vld [vmem:[%s5039_s3 + $0x258] sm:$0xff]  ;;  %v3774_v35 = vld [vmem:[%s5039_s3 + $0x2a8] sm:$0xff] }
 0x143   :  { %1725 = vmatpush.bf16.msra.mxu0 %v3758_v6  ;;  %1883 = vmatpush.bf16.msra.mxu2 %v3776_v30 }
 0x144   :  { %v991_v50 = vadd.f32 %v4657_v8, %v971_v34  ;;  %v889_v18 = vpop.f32.mrf.mxu2  ;;  %1650 = vmatpush.bf16.msrb.mxu3 %v3745_v4  ;;  %1807 = vmatpush.bf16.msra.mxu1 %v3764_v7  ;;  %v3783_v34 = vld [vmem:[%s5039_s3 + $0x2f0] sm:$0xff] }
 0x146   :  { %v1007_v27 = vmax.f32 %v991_v50, 0.0  ;;  %v681_v3 = vpop.f32.mrf.mxu0  ;;  %v3754_v50 = vld [vmem:[%s5039_s3 + $0x208] sm:$0xff] }
 0x147   :  { %v938_v24 = vpop.f32.mrf.mxu3  ;;  %1726 = vmatpush.bf16.msra.mxu0 %v3757_v44  ;;  %v730_v6 = vpop.f32.mrf.mxu1  ;;  %1884 = vmatpush.bf16.msra.mxu2 %v3775_v31 }
 0x148   :  { %v1257_v39 = vpack.c.bf16 %v1007_v27, %v1007_v27  ;;  %v939_v52 = vadd.f32 %v938_v24, %v889_v18  ;;  %v731_v32 = vadd.f32 %v730_v6, %v681_v3  ;;  %1808 = vmatpush.bf16.msra.mxu1 %v3763_v62  ;;  %v3762_v18 = vld [vmem:[%s5039_s3 + $0x248] sm:$0xff]  ;;  %v3772_v24 = vld [vmem:[%s5039_s3 + $0x298] sm:$0xff]  ;;  %v3771_v3 = vld [vmem:[%s5039_s3 + $0x290] sm:$0xff] }
 0x149   :  { %v3781_v6 = vld [vmem:[%s5039_s3 + $0x2e0] sm:$0xff] }
 0x14a   :  { %v972_v19 = vmax.f32 %v762_v51, %v939_v52  ;;  %1331 = vmatmul.bf16.vlgmr.msra.gmra.mxu3 %v1257_v39  ;;  %v763_v4 = vmax.f32 %v553_v16, %v731_v32  ;;  %v3792_v51 = vld [vmem:[%s5039_s3 + $0x338] sm:$0xff]  ;;  %v3761_v52 = vld [vmem:[%s5039_s3 + $0x240] sm:$0xff] }
 0x14b   :  { %1727 = vmatpush.bf16.msra.mxu0 %v3756_v38  ;;  %1885 = vmatpush.bf16.msra.mxu2 %v3774_v35  ;;  %v3782_v38 = vld [vmem:[%s5039_s3 + $0x2e8] sm:$0xff] }
 0x14c   :  { %v992_v57 = vadd.f32 %v4657_v8, %v972_v19  ;;  %1963 = vmatpush.bf16.msra.mxu3 %v3784_v49  ;;  %v891_v30 = vpop.f32.mrf.mxu2  ;;  %1809 = vmatpush.bf16.msra.mxu1 %v3762_v18 }
 0x14e   :  { %v1008_v5 = vmax.f32 %v992_v57, 0.0  ;;  %v684_v27 = vpop.f32.mrf.mxu0 }
 0x14f   :  { %v940_v44 = vpop.f32.mrf.mxu3  ;;  %1728 = vmatpush.bf16.msra.mxu0 %v3755_v53  ;;  %v733_v31 = vpop.f32.mrf.mxu1  ;;  %1886 = vmatpush.bf16.msra.mxu2 %v3773_v1  ;;  %v3791_v1 = vld [vmem:[%s5039_s3 + $0x330] sm:$0xff] }
 0x150   :  { %v1337_v36 = vpack.c.bf16 %v1008_v5, %v1008_v5  ;;  %v941_v23 = vadd.f32 %v940_v44, %v891_v30  ;;  %1964 = vmatpush.bf16.msra.mxu3 %v3783_v34  ;;  %v734_v39 = vadd.f32 %v733_v31, %v684_v27  ;;  %1810 = vmatpush.bf16.msra.mxu1 %v3761_v52  ;;  %v3770_v5 = vld [vmem:[%s5039_s3 + $0x288] sm:$0xff] }
 0x151   :  { %v3790_v44 = vld [vmem:[%s5039_s3 + $0x328] sm:$0xff] }
 0x152   :  { %v973_v56 = vmax.f32 %v763_v4, %v941_v23  ;;  %1411 = vmatmul.bf16.vlgmr.msrb.gmra.mxu0 %v1337_v36  ;;  %v764_v53 = vmax.f32 %v554_v26, %v734_v39  ;;  %v3800_v26 = vld [vmem:[%s5039_s3 + $0x378] sm:$0xff]  ;;  %v3779_v36 = vld [vmem:[%s5039_s3 + $0x2d0] sm:$0xff]  ;;  %v3778_v39 = vld [vmem:[%s5039_s3 + $0x2c8] sm:$0xff] }
 0x153   :  { %1729 = vmatpush.bf16.msra.mxu0 %v3754_v50  ;;  %1887 = vmatpush.bf16.msra.mxu2 %v3772_v24  ;;  %v3769_v50 = vld [vmem:[%s5039_s3 + $0x280] sm:$0xff]  ;;  %v3799_v23 = vld [vmem:[%s5039_s3 + $0x370] sm:$0xff] }
 0x154   :  { %v993_v16 = vadd.f32 %v4657_v8, %v973_v56  ;;  %1965 = vmatpush.bf16.msra.mxu3 %v3782_v38  ;;  %v894_v35 = vpop.f32.mrf.mxu2 }
 0x156   :  { %v1009_v7 = vmax.f32 %v993_v16, 0.0  ;;  %v686_v32 = vpop.f32.mrf.mxu0  ;;  %v3789_v16 = vld [vmem:[%s5039_s3 + $0x320] sm:$0xff] }
 0x157   :  { %v943_v19 = vpop.f32.mrf.mxu3  ;;  %1730 = vmatpush.bf16.msra.mxu0 %v3753_v10  ;;  %v735_v62 = vpop.f32.mrf.mxu1  ;;  %1888 = vmatpush.bf16.msra.mxu2 %v3771_v3  ;;  %v3788_v3 = vld [vmem:[%s5039_s3 + $0x318] sm:$0xff] }
 0x158   :  { %v1417_v49 = vpack.c.bf16 %v1009_v7, %v1009_v7  ;;  %v944_v57 = vadd.f32 %v943_v19, %v894_v35  ;;  %1966 = vmatpush.bf16.msra.mxu3 %v3781_v6  ;;  %v736_v30 = vadd.f32 %v735_v62, %v686_v32  ;;  %v3777_v6 = vld [vmem:[%s5039_s3 + $0x2c0] sm:$0xff]  ;;  %v3807_v19 = vld [vmem:[%s5039_s3 + $0x3b0] sm:$0xff] }
 0x159   :  { %v3797_v7 = vld [vmem:[%s5039_s3 + $0x360] sm:$0xff] }
 0x15a   :  { %v974_v20 = vmax.f32 %v764_v53, %v944_v57  ;;  %1491 = vmatmul.bf16.vlgmr.msrb.gmra.mxu1 %v1417_v49  ;;  %v765_v24 = vmax.f32 %v555_v58, %v736_v30  ;;  %v3808_v58 = vld [vmem:[%s5039_s3 + $0x3b8] sm:$0xff] }
 0x15b   :  { %2043 = vmatpush.bf16.msrb.mxu0 %v3792_v51  ;;  %2123 = vmatpush.bf16.msrb.mxu1 %v3800_v26  ;;  %v3816_v26 = vld [vmem:[%s5039_s3 + $0x3f8] sm:$0xff] }
 0x15c   :  { %v994_v34 = vadd.f32 %v4657_v8, %v974_v20  ;;  %1889 = vmatpush.bf16.msra.mxu2 %v3770_v5  ;;  %1967 = vmatpush.bf16.msra.mxu3 %v3780_v15  ;;  %v896_v27 = vpop.f32.mrf.mxu2  ;;  %v3787_v15 = vld [vmem:[%s5039_s3 + $0x310] sm:$0xff]  ;;  %v3796_v20 = vld [vmem:[%s5039_s3 + $0x358] sm:$0xff] }
 0x15e   :  { %v1010_v4 = vmax.f32 %v994_v34, 0.0  ;;  %v689_v56 = vpop.f32.mrf.mxu0  ;;  %v337_v34 = vadd.f32 %v4409_v0, %v4407_v63 }
 0x15f   :  { %2044 = vmatpush.bf16.msrb.mxu0 %v3791_v1  ;;  %v945_v31 = vpop.f32.mrf.mxu3  ;;  %v738_v10 = vpop.f32.mrf.mxu1  ;;  %2124 = vmatpush.bf16.msrb.mxu1 %v3799_v23 }
 0x160   :  { %v1497_v18 = vpack.c.bf16 %v1010_v4, %v1010_v4  ;;  %v946_v38 = vadd.f32 %v945_v31, %v896_v27  ;;  %1890 = vmatpush.bf16.msra.mxu2 %v3769_v50  ;;  %1968 = vmatpush.bf16.msra.mxu3 %v3779_v36  ;;  %v739_v52 = vadd.f32 %v738_v10, %v689_v56  ;;  %v3786_v50 = vld [vmem:[%s5039_s3 + $0x308] sm:$0xff]  ;;  %v3815_v36 = vld [vmem:[%s5039_s3 + $0x3f0] sm:$0xff]  ;;  %v3785_v56 = vld [vmem:[%s5039_s3 + $0x300] sm:$0xff] }
 0x161   :  { %v557_v63 = vmax.f32 %v337_v34, %v531_v61  ;;  %v3794_v10 = vld [vmem:[%s5039_s3 + $0x348] sm:$0xff] }
 0x162   :  { %v975_v47 = vmax.f32 %v765_v24, %v946_v38  ;;  %1571 = vmatmul.bf16.vlgmr.msrb.gmra.mxu2 %v1497_v18  ;;  %v766_v32 = vmax.f32 %v556_v2, %v739_v52  ;;  %v3803_v52 = vld [vmem:[%s5039_s3 + $0x390] sm:$0xff] }
 0x163   :  { %2045 = vmatpush.bf16.msrb.mxu0 %v3790_v44  ;;  %2125 = vmatpush.bf16.msrb.mxu1 %v3798_v25 }
 0x164   :  { %v995_v51 = vadd.f32 %v4657_v8, %v975_v47  ;;  %1969 = vmatpush.bf16.msra.mxu3 %v3778_v39  ;;  %2203 = vmatpush.bf16.msrb.mxu2 %v3808_v58  ;;  %v899_v49 = vpop.f32.mrf.mxu2  ;;  %v3814_v39 = vld [vmem:[%s5039_s3 + $0x3e8] sm:$0xff] }
 0x166   :  { %v1011_v35 = vmax.f32 %v995_v51, 0.0  ;;  %v691_v1 = vpop.f32.mrf.mxu0  ;;  %v3793_v51 = vld [vmem:[%s5039_s3 + $0x340] sm:$0xff] }
 0x167   :  { %2046 = vmatpush.bf16.msrb.mxu0 %v3789_v16  ;;  %v948_v53 = vpop.f32.mrf.mxu3  ;;  %v740_v5 = vpop.f32.mrf.mxu1  ;;  %2126 = vmatpush.bf16.msrb.mxu1 %v3797_v7  ;;  %v3804_v16 = vld [vmem:[%s5039_s3 + $0x398] sm:$0xff] }
 0x168   :  { %v1577_v57 = vpack.c.bf16 %v1011_v35, %v1011_v35  ;;  %v949_v62 = vadd.f32 %v948_v53, %v899_v49  ;;  %1970 = vmatpush.bf16.msra.mxu3 %v3777_v6  ;;  %2204 = vmatpush.bf16.msrb.mxu2 %v3807_v19  ;;  %v741_v44 = vadd.f32 %v740_v5, %v691_v1  ;;  %v3812_v1 = vld [vmem:[%s5039_s3 + $0x3d8] sm:$0xff] }
 0x169   :  { %v536_v5 = vadd.f32 %v4504_v12, %v4502_v11 }
 0x16a   :  { %v976_v2 = vmax.f32 %v766_v32, %v949_v62  ;;  %1651 = vmatmul.bf16.vlgmr.msrb.gmra.mxu3 %v1577_v57  ;;  %v767_v31 = vmax.f32 %v557_v63, %v741_v44  ;;  %v3802_v62 = vld [vmem:[%s5039_s3 + $0x388] sm:$0xff]  ;;  %v3809_v63 = vld [vmem:[%s5039_s3 + $0x3c0] sm:$0xff] }
 0x16b   :  { %2047 = vmatpush.bf16.msrb.mxu0 %v3788_v3  ;;  %2127 = vmatpush.bf16.msrb.mxu1 %v3796_v20  ;;  %v3813_v3 = vld [vmem:[%s5039_s3 + $0x3e0] sm:$0xff]  ;;  %v559_v61 = vmax.f32 %v342_v37, %v536_v5  ;;  %v3810_v44 = vld [vmem:[%s5039_s3 + $0x3c8] sm:$0xff]  ;;  %v352_v5 = vadd.f32 %v4595_v17, %v4593_v14 }
 0x16c   :  { %v996_v30 = vadd.f32 %v4657_v8, %v976_v2  ;;  %2205 = vmatpush.bf16.msrb.mxu2 %v3806_v55  ;;  %2283 = vmatpush.bf16.msrb.mxu3 %v3816_v26  ;;  %v901_v4 = vpop.f32.mrf.mxu2  ;;  %v3801_v20 = vld [vmem:[%s5039_s3 + $0x380] sm:$0xff]  ;;  %v3811_v55 = vld [vmem:[%s5039_s3 + $0x3d0] sm:$0xff] }
 0x16e   :  { %v1012_v0 = vmax.f32 %v996_v30, 0.0  ;;  %v694_v24 = vpop.f32.mrf.mxu0 }
 0x16f   :  { %2048 = vmatpush.bf16.msrb.mxu0 %v3787_v15  ;;  %v950_v23 = vpop.f32.mrf.mxu3  ;;  %v743_v38 = vpop.f32.mrf.mxu1  ;;  %2128 = vmatpush.bf16.msrb.mxu1 %v3795_v22 }
 0x170   :  { %v1657_v27 = vpack.c.bf16 %v1012_v0, %v1012_v0  ;;  %v951_v18 = vadd.f32 %v950_v23, %v901_v4  ;;  %2206 = vmatpush.bf16.msrb.mxu2 %v3805_v28  ;;  %2284 = vmatpush.bf16.msrb.mxu3 %v3815_v36  ;;  %v744_v58 = vadd.f32 %v743_v38, %v694_v24 }
 0x171   :  { %v541_v38 = vadd.f32 %v4569_v29, %v4567_v21 }
 0x172   :  { %v977_v25 = vmax.f32 %v767_v31, %v951_v18  ;;  %1731 = vmatmul.bf16.vlgmr.msra.gmra.mxu0 %v1657_v27  ;;  %v768_v49 = vmax.f32 %v558_v45, %v744_v58 }
 0x173   :  { %2049 = vmatpush.bf16.msrb.mxu0 %v3786_v50  ;;  %2129 = vmatpush.bf16.msrb.mxu1 %v3794_v10  ;;  %v347_v10 = vadd.f32 %v4524_v48, %v4522_v46 }
 0x174   :  { %v997_v47 = vadd.f32 %v4657_v8, %v977_v25  ;;  %2207 = vmatpush.bf16.msrb.mxu2 %v3804_v16  ;;  %2285 = vmatpush.bf16.msrb.mxu3 %v3814_v39  ;;  %v904_v7 = vpop.f32.mrf.mxu2 }
 0x175   :  { %v561_v25 = vmax.f32 %v347_v10, %v541_v38  ;;  %v3824_v38 = vld [vmem:[%s5042_s5 + $0x38] sm:$0xff] }
 0x176   :  { %v1013_v6 = vmax.f32 %v997_v47, 0.0  ;;  %v696_v57 = vpop.f32.mrf.mxu0 }
 0x177   :  { %2050 = vmatpush.bf16.msrb.mxu0 %v3785_v56  ;;  %v953_v35 = vpop.f32.mrf.mxu3  ;;  %v745_v32 = vpop.f32.mrf.mxu1  ;;  %2130 = vmatpush.bf16.msrb.mxu1 %v3793_v51 }
 0x178   :  { %v1737_v19 = vpack.c.bf16 %v1013_v6, %v1013_v6  ;;  %v954_v53 = vadd.f32 %v953_v35, %v904_v7  ;;  %2208 = vmatpush.bf16.msrb.mxu2 %v3803_v52  ;;  %2286 = vmatpush.bf16.msrb.mxu3 %v3813_v3  ;;  %v746_v45 = vadd.f32 %v745_v32, %v696_v57 }
 0x17a   :  { %v978_v15 = vmax.f32 %v768_v49, %v954_v53  ;;  %1811 = vmatmul.bf16.vlgmr.msra.gmra.mxu1 %v1737_v19  ;;  %v769_v34 = vmax.f32 %v559_v61, %v746_v45  ;;  %v5046_v19 = vmax.f32 %v4577_v13, %v4591_v9 }
 0x17b   :  { %2372 = vmatpush.bf16.msra.mxu0 %v3824_v38 }
 0x17c   :  { %v998_v40 = vadd.f32 %v4657_v8, %v978_v15  ;;  %2209 = vmatpush.bf16.msrb.mxu2 %v3802_v62  ;;  %2287 = vmatpush.bf16.msrb.mxu3 %v3812_v1  ;;  %v906_v12 = vpop.f32.mrf.mxu2  ;;  %v546_v62 = vadd.f32 %v4625_v60, %v4623_v59 }
 0x17e   :  { %v1014_v11 = vmax.f32 %v998_v40, 0.0  ;;  %v699_v42 = vpop.f32.mrf.mxu0  ;;  %v563_v40 = vmax.f32 %v352_v5, %v546_v62  ;;  %v3829_v62 = vld [vmem:[%s5043_s7 + $0x20] sm:$0xff] }
 0x17f   :  { %v955_v2 = vpop.f32.mrf.mxu3  ;;  %v748_v30 = vpop.f32.mrf.mxu1 }
 0x180   :  { %v1817_v26 = vpack.c.bf16 %v1014_v11, %v1014_v11  ;;  %v956_v41 = vadd.f32 %v955_v2, %v906_v12  ;;  %2210 = vmatpush.bf16.msrb.mxu2 %v3801_v20  ;;  %2288 = vmatpush.bf16.msrb.mxu3 %v3811_v55  ;;  %v749_v28 = vadd.f32 %v748_v30, %v699_v42 }
 0x182   :  { %v979_v50 = vmax.f32 %v769_v34, %v956_v41  ;;  %1891 = vmatmul.bf16.vlgmr.msra.gmra.mxu2 %v1817_v26  ;;  %v770_v27 = vmax.f32 %v560_v54, %v749_v28 }
 0x184   :  { %v999_v22 = vadd.f32 %v4657_v8, %v979_v50  ;;  %2289 = vmatpush.bf16.msrb.mxu3 %v3810_v44  ;;  %v909_v36 = vpop.f32.mrf.mxu2 }
 0x186   :  { %v1015_v0 = vmax.f32 %v999_v22, 0.0  ;;  %v701_v18 = vpop.f32.mrf.mxu0 }
 0x187   :  { %v958_v4 = vpop.f32.mrf.mxu3  ;;  %v750_v24 = vpop.f32.mrf.mxu1 }
 0x188   :  { %v1897_v23 = vpack.c.bf16 %v1015_v0, %v1015_v0  ;;  %v959_v31 = vadd.f32 %v958_v4, %v909_v36  ;;  %2290 = vmatpush.bf16.msrb.mxu3 %v3809_v63  ;;  %v751_v39 = vadd.f32 %v750_v24, %v701_v18 }
 0x18a   :  { %v980_v56 = vmax.f32 %v770_v27, %v959_v31  ;;  %1971 = vmatmul.bf16.vlgmr.msra.gmra.mxu3 %v1897_v23  ;;  %v771_v54 = vmax.f32 %v561_v25, %v751_v39  ;;  %v3822_v39 = vld [vmem:[%s5042_s5 + $0x28] sm:$0xff] }
 0x18c   :  { %v1000_v16 = vadd.f32 %v4657_v8, %v980_v56  ;;  %v911_v58 = vpop.f32.mrf.mxu2 }
 0x18e   :  { %v1016_v47 = vmax.f32 %v1000_v16, 0.0  ;;  %v704_v52 = vpop.f32.mrf.mxu0  ;;  %v3823_v16 = vld [vmem:[%s5042_s5 + $0x30] sm:$0xff] }
 0x18f   :  { %v960_v33 = vpop.f32.mrf.mxu3  ;;  %v753_v3 = vpop.f32.mrf.mxu1  ;;  %2373 = vmatpush.bf16.msra.mxu0 %v3823_v16 }
 0x190   :  { %v1977_v43 = vpack.c.bf16 %v1016_v47, %v1016_v47  ;;  %v961_v51 = vadd.f32 %v960_v33, %v911_v58  ;;  %v754_v29 = vadd.f32 %v753_v3, %v704_v52  ;;  %v3821_v47 = vld [vmem:[%s5042_s5 + $0x20] sm:$0xff]  ;;  %v3820_v33 = vld [vmem:[%s5042_s5 + $0x18] sm:$0xff]  ;;  %v3818_v52 = vld [vmem:[%s5042_s5 + $0x8] sm:$0xff] }
 0x192   :  { %v981_v6 = vmax.f32 %v771_v54, %v961_v51  ;;  %2051 = vmatmul.bf16.vlgmr.msrb.gmra.mxu0 %v1977_v43  ;;  %v772_v49 = vmax.f32 %v5046_v19, %v754_v29  ;;  %v3819_v43 = vld [vmem:[%s5042_s5 + $0x10] sm:$0xff]  ;;  %v3832_v29 = vld [vmem:[%s5043_s7 + $0x38] sm:$0xff] }
 0x193   :  { %2374 = vmatpush.bf16.msra.mxu0 %v3822_v39  ;;  %2455 = vmatpush.bf16.msra.mxu1 %v3832_v29 }
 0x194   :  { %v1001_v21 = vadd.f32 %v4657_v8, %v981_v6  ;;  %v914_v35 = vpop.f32.mrf.mxu2  ;;  %v3817_v6 = vld [vmem:[%s5042_s5] sm:$0xff] }
 0x196   :  { %v1017_v7 = vmax.f32 %v1001_v21, 0.0  ;;  %v706_v57 = vpop.f32.mrf.mxu0 }
 0x197   :  { %v963_v46 = vpop.f32.mrf.mxu3  ;;  %v755_v32 = vpop.f32.mrf.mxu1  ;;  %2375 = vmatpush.bf16.msra.mxu0 %v3821_v47 }
 0x198   :  { %v2057_v48 = vpack.c.bf16 %v1017_v7, %v1017_v7  ;;  %v964_v53 = vadd.f32 %v963_v46, %v914_v35  ;;  %v756_v37 = vadd.f32 %v755_v32, %v706_v57 }
 0x19a   :  { %v982_v1 = vmax.f32 %v772_v49, %v964_v53  ;;  %2131 = vmatmul.bf16.vlgmr.msrb.gmra.mxu1 %v2057_v48  ;;  %v773_v9 = vmax.f32 %v563_v40, %v756_v37  ;;  %v3831_v48 = vld [vmem:[%s5043_s7 + $0x30] sm:$0xff]  ;;  %v3830_v49 = vld [vmem:[%s5043_s7 + $0x28] sm:$0xff] }
 0x19b   :  { %2376 = vmatpush.bf16.msra.mxu0 %v3820_v33  ;;  %2456 = vmatpush.bf16.msra.mxu1 %v3831_v48 }
 0x19c   :  { %v1002_v15 = vadd.f32 %v4657_v8, %v982_v1  ;;  %v916_v20 = vpop.f32.mrf.mxu2 }
 0x19e   :  { %v1018_v45 = vmax.f32 %v1002_v15, 0.0  ;;  %v3828_v15 = vld [vmem:[%s5043_s7 + $0x18] sm:$0xff] }
 0x19f   :  { %v965_v55 = vpop.f32.mrf.mxu3  ;;  %2377 = vmatpush.bf16.msra.mxu0 %v3819_v43  ;;  %2457 = vmatpush.bf16.msra.mxu1 %v3830_v49 }
 0x1a0   :  { %v2137_v13 = vpack.c.bf16 %v1018_v45, %v1018_v45  ;;  %v966_v61 = vadd.f32 %v965_v55, %v916_v20  ;;  %v3827_v45 = vld [vmem:[%s5043_s7 + $0x10] sm:$0xff] }
 0x1a2   :  { %v983_v11 = vmax.f32 %v773_v9, %v966_v61  ;;  %2211 = vmatmul.bf16.vlgmr.msrb.gmra.mxu2 %v2137_v13  ;;  %v3834_v13 = vld [vmem:[%s5040_s4] ss:$0 sm:$0xff] }
 0x1a3   :  { %2378 = vmatpush.bf16.msra.mxu0 %v3818_v52  ;;  %2458 = vmatpush.bf16.msra.mxu1 %v3829_v62 }
 0x1a4   :  { %v1003_v12 = vadd.f32 %v4657_v8, %v983_v11 }
 0x1a6   :  { %v1019_v59 = vmax.f32 %v1003_v12, 0.0 }
 0x1a7   :  { %2379 = vmatpush.bf16.msra.mxu0 %v3817_v6  ;;  %2459 = vmatpush.bf16.msra.mxu1 %v3828_v15 }
 0x1a8   :  { %v2217_v60 = vpack.c.bf16 %v1019_v59, %v1019_v59 }
 0x1aa   :  { %2291 = vmatmul.bf16.vlgmr.msrb.gmra.mxu3 %v2217_v60 }
 0x1ab   :  { %2460 = vmatpush.bf16.msra.mxu1 %v3827_v45 }
 0x1af   :  { %v1173_v2 = vpop.f32.mrf.mxu1 }
 0x1b7   :  { %v1112_v26 = vpop.f32.mrf.mxu0  ;;  %v1175_v14 = vpop.f32.mrf.mxu1 }
 0x1b8   :  { %v1174_v17 = vadd.f32 %v1173_v2, %v1112_v26  ;;  %v3826_v26 = vld [vmem:[%s5043_s7 + $0x8] sm:$0xff]  ;;  %v3825_v14 = vld [vmem:[%s5043_s7] sm:$0xff] }
 0x1b9   :  { %2461 = vmatpush.bf16.msra.mxu1 %v3826_v26 }
 0x1bd   :  { %2462 = vmatpush.bf16.msra.mxu1 %v3825_v14 }
 0x1bf   :  { %v1114_v34 = vpop.f32.mrf.mxu0 }
 0x1c5   :  { %v1252_v41 = vpop.f32.mrf.mxu2 }
 0x1c6   :  { %v1256_v42 = vadd.f32 %v1252_v41, %v1174_v17  ;;  %v3835_v17 = vld [vmem:[%s5041_s6] ss:$0 sm:$0xff] }
 0x1cd   :  { %v1254_v30 = vpop.f32.mrf.mxu2  ;;  %v1332_v44 = vpop.f32.mrf.mxu3 }
 0x1ce   :  { %v1336_v50 = vadd.f32 %v1332_v44, %v1256_v42 }
 0x1cf   :  { %v1412_v22 = vpop.f32.mrf.mxu0 }
 0x1d0   :  { %v1416_v28 = vadd.f32 %v1412_v22, %v1336_v50  ;;  %v3836_v50 = vld [vmem:[%s5044_s8] ss:$0 sm:$0xff] }
 0x1d5   :  { %v1334_v63 = vpop.f32.mrf.mxu3 }
 0x1d7   :  { %v1414_v0 = vpop.f32.mrf.mxu0  ;;  %v1492_v36 = vpop.f32.mrf.mxu1 }
 0x1d8   :  { %v1496_v4 = vadd.f32 %v1492_v36, %v1416_v28 }
 0x1df   :  { %v1494_v8 = vpop.f32.mrf.mxu1 }
 0x1e5   :  { %v1572_v23 = vpop.f32.mrf.mxu2 }
 0x1e6   :  { %v1576_v46 = vadd.f32 %v1572_v23, %v1496_v4 }
 0x1ed   :  { %v1574_v27 = vpop.f32.mrf.mxu2  ;;  %v1652_v31 = vpop.f32.mrf.mxu3 }
 0x1ee   :  { %v1656_v19 = vadd.f32 %v1652_v31, %v1576_v46 }
 0x1ef   :  { %v1732_v18 = vpop.f32.mrf.mxu0 }
 0x1f0   :  { %v1736_v53 = vadd.f32 %v1732_v18, %v1656_v19 }
 0x1f5   :  { %v1654_v24 = vpop.f32.mrf.mxu3 }
 0x1f7   :  { %v1734_v56 = vpop.f32.mrf.mxu0  ;;  %v1812_v10 = vpop.f32.mrf.mxu1 }
 0x1f8   :  { %v1816_v32 = vadd.f32 %v1812_v10, %v1736_v53 }
 0x1ff   :  { %v1814_v25 = vpop.f32.mrf.mxu1 }
 0x205   :  { %v1892_v58 = vpop.f32.mrf.mxu2 }
 0x206   :  { %v1896_v1 = vadd.f32 %v1892_v58, %v1816_v32 }
 0x20d   :  { %v1894_v54 = vpop.f32.mrf.mxu2  ;;  %v1972_v51 = vpop.f32.mrf.mxu3 }
 0x20e   :  { %v1976_v5 = vadd.f32 %v1972_v51, %v1896_v1 }
 0x20f   :  { %v2052_v3 = vpop.f32.mrf.mxu0 }
 0x210   :  { %v2056_v40 = vadd.f32 %v2052_v3, %v1976_v5 }
 0x215   :  { %v1974_v21 = vpop.f32.mrf.mxu3 }
 0x217   :  { %v2054_v7 = vpop.f32.mrf.mxu0  ;;  %v2132_v35 = vpop.f32.mrf.mxu1 }
 0x218   :  { %v2136_v20 = vadd.f32 %v2132_v35, %v2056_v40 }
 0x21f   :  { %v2134_v57 = vpop.f32.mrf.mxu1 }
 0x225   :  { %v2212_v37 = vpop.f32.mrf.mxu2 }
 0x226   :  { %v2216_v55 = vadd.f32 %v2212_v37, %v2136_v20 }
 0x22d   :  { %v2214_v9 = vpop.f32.mrf.mxu2  ;;  %v2292_v61 = vpop.f32.mrf.mxu3 }
 0x22e   :  { %v2296_v11 = vadd.f32 %v2292_v61, %v2216_v55 }
 0x230   :  { %v2301_v12 = vadd.f32 %v3834_v13, %v2296_v11 }
 0x232   :  { %v2302_v59 = vmax.f32 %v2301_v12, 0.0 }
 0x234   :  { %v2303_v60 = vpack.c.bf16 %v2302_v59, %v2302_v59 }
 0x235   :  { %v2294_v2 = vpop.f32.mrf.mxu3 }
 0x236   :  { %2380 = vmatmul.bf16.vlgmr.msra.gmra.mxu0 %v2303_v60 }
 0x2b3   :  { %v2381_v34 = vpop.f32.mrf.mxu0 }
 0x2b4   :  { %v2382_v41 = vadd.f32 %v3835_v17, %v2381_v34 }
 0x2b6   :  { %v2385_v42 = vmax.f32 %v2382_v41, 0.0 }
 0x2b8   :  { %v2386_v30 = vpack.c.bf16 %v2385_v42, %v2385_v42 }
 0x2ba   :  { %2463 = vmatmul.bf16.vlgmr.msra.gmra.mxu1 %v2386_v30 }
 0x2bb   :  { %v2383_v44 = vpop.f32.mrf.mxu0 }
 0x337   :  { %v2464_v22 = vpop.f32.mrf.mxu1 }
 0x338   :  { %v2465_v28 = vadd.f32 %v3836_v50, %v2464_v22 }
 0x33a   :  { %2468 = vst [vmem:[%s5045_s9] sm:$0xff] %v2465_v28 }
 0x33f   :  { %v2466_v63 = vpop.f32.mrf.mxu1 }

</bundles_post_ra>
